<compile_context>
chip_gen: v7x
topology: tpu7x:2x2x1
jax: 0.10.0
libtpu: 0.0.40
codegen_flags: <defaults>
</compile_context>

<pallas_src>
import functools

import jax
import jax.numpy as jnp
from jax import lax
from jax.experimental import pallas as pl
from jax.experimental.pallas import tpu as pltpu


# ----------------------------------------------------------------------------
# Fused kernel.  Grid = (bsz, n_head); one head of one batch element per step.
# ----------------------------------------------------------------------------
def _fused_layer_kernel(d_head, eps,
                        w_ref, wqkv_ref, rwb_ref, remb_ref, rbias_ref,
                        maskadd_ref, wo_ref,
                        ln1g_ref, ln1b_ref,
                        w1_ref, b1_ref, w2_ref, b2_ref,
                        ln2g_ref, ln2b_ref,
                        out_ref,
                        acc_ref):
    h = pl.program_id(1)
    n_head = pl.num_programs(1)
    D = d_head
    bf16 = jnp.bfloat16

    w_f32 = w_ref[0]                                   # (qlen, d_model) f32
    qlen = w_f32.shape[0]

    # Initialize the accumulator with the residual input at the first head.
    @pl.when(h == 0)
    def _init():
        acc_ref[...] = w_f32

    # --- qkv projection for this head (scale already folded into q columns) --
    heads = jnp.dot(w_f32.astype(bf16), wqkv_ref[0],
                    preferred_element_type=jnp.float32)        # (qlen, 3*D) f32
    qh = heads[:, 0 * D:1 * D]                                 # pre-scaled q
    kh = heads[:, 1 * D:2 * D]
    vh = heads[:, 2 * D:3 * D]

    def mm_nt(a, b):   # (m, d) x (n, d) -> (m, n) on the MXU, bf16 in / f32 acc
        return lax.dot_general(a.astype(bf16), b.astype(bf16),
                               (((1,), (1,)), ((), ())),
                               preferred_element_type=jnp.float32)

    rw_q = qh + rwb_ref[0]                                     # + scaled r_w_bias[h]
    ac = mm_nt(rw_q, kh)                                       # (qlen, klen)
    bd_pre = mm_nt(qh, remb_ref[0]) + rbias_ref[0]             # B_ + D_ (pre-shift)
    klen = bd_pre.shape[1]

    # --- in-register rel_shift: bd[i, j] = bd_pre[i, (j + (qlen-1-i)) % klen] -
    # Circular binary shift-and-select (static lane slices + jnp.where only).
    # For the unmasked (causal) region j + (qlen-1-i) < klen, so no wraparound
    # affects valid positions; wrapped garbage is killed by the additive mask,
    # matching the reference post-softmax.
    row = lax.broadcasted_iota(jnp.int32, (qlen, 1), 0)
    shift_amt = (qlen - 1) - row                                # per-row left shift
    nbits = max(1, (qlen - 1).bit_length())
    bd = bd_pre
    for t in range(nbits):
        step = 1 << t
        rolled = jnp.concatenate([bd[:, step:], bd[:, :step]], axis=1)  # left-rot by step
        take = ((shift_amt >> t) & 1) == 1
        bd = jnp.where(take, rolled, bd)

    # --- masked softmax (additive mask) + value aggregation ------------------
    score = ac + bd + maskadd_ref[0]                            # f32
    m = jnp.max(score, axis=-1, keepdims=True)
    e = jnp.exp(score - m)
    denom = jnp.sum(e, axis=-1, keepdims=True)
    vec = jnp.dot(e.astype(bf16), vh.astype(bf16),
                  preferred_element_type=jnp.float32)           # (qlen, D), unnormalized
    vec = vec * pl.reciprocal(denom, approx=True)

    # --- per-head slice of o_net, accumulated over heads ---------------------
    acc_ref[...] += jnp.dot(vec.astype(bf16), wo_ref[0],
                            preferred_element_type=jnp.float32)  # (qlen, d_model)

    # --- finalize at the last head: LN -> FF -> LN ----------------------------
    @pl.when(h == n_head - 1)
    def _finalize():
        def layer_norm(x, g, b):
            mu = jnp.mean(x, axis=-1, keepdims=True)
            var = jnp.mean(jnp.square(x - mu), axis=-1, keepdims=True)
            return (x - mu) * lax.rsqrt(var + eps) * g + b

        x = acc_ref[...]                                        # w + attn_out
        y = layer_norm(x, ln1g_ref[...], ln1b_ref[...])
        h1 = jnp.dot(y.astype(bf16), w1_ref[...],
                     preferred_element_type=jnp.float32) + b1_ref[...]
        h1 = jnp.maximum(h1, 0.0)
        core = jnp.dot(h1.astype(bf16), w2_ref[...],
                       preferred_element_type=jnp.float32) + b2_ref[...]
        z = y + core
        out_ref[0] = layer_norm(z, ln2g_ref[...], ln2b_ref[...]).astype(out_ref.dtype)


# ----------------------------------------------------------------------------
# Wrapper (parameter re-layout is one-time O(params) XLA work).
# ----------------------------------------------------------------------------
def rel_learnable_decoder_layer(dec_inp, r_emb, r_w_bias, r_bias, dec_attn_mask,
                                params, n_head, d_head, d_inner):
    qlen, bsz, d_model = dec_inp.shape
    klen = qlen  # TODO(synk): mems concatenation path (klen > qlen) not implemented.
    H, D = n_head, d_head
    f32, bf16 = jnp.float32, jnp.bfloat16
    scale = 1.0 / (d_head ** 0.5)

    w_bm = jnp.transpose(dec_inp, (1, 0, 2)).astype(f32)        # (bsz, qlen, d_model)

    # qkv weight -> (H, d_model, 3*D), with the softmax scale folded into q cols.
    wqkv = params["w_qkv"].astype(f32)                          # (d_model, 3*H*D)
    wqkv_h = wqkv.reshape(d_model, 3, H, D).transpose(2, 0, 1, 3).reshape(H, d_model, 3 * D)
    col_scale = jnp.concatenate([jnp.full((D,), scale, f32), jnp.ones((2 * D,), f32)])
    wqkv_h = (wqkv_h * col_scale[None, None, :]).astype(bf16)

    r_emb_h = jnp.transpose(r_emb[-klen:].astype(f32), (1, 0, 2)).astype(bf16)   # (H, klen, D)
    r_w_bias_h = (r_w_bias.astype(f32) * scale).reshape(H, 1, D)                 # pre-scaled
    r_bias_h = (jnp.transpose(r_bias[-klen:].astype(f32), (1, 0)) * scale).reshape(H, 1, klen)
    wo_h = params["w_o"].astype(f32).reshape(H, D, d_model).astype(bf16)         # (H, D, d_model)

    # Additive attention mask.  If it is batch-invariant (2-D mask, or 3-D with
    # a size-1 batch axis -- the common causal case) keep a single copy so the
    # kernel DMAs it only once.
    if dec_attn_mask is None:
        mask_add = jnp.zeros((1, qlen, klen), f32)
    else:
        m = dec_attn_mask
        if m.ndim == 2:
            m = m[:, :, None]
        m = m.astype(bool)
        if m.shape[2] == 1:
            m_b = jnp.transpose(m, (2, 0, 1))                                    # (1, q, k)
        else:
            m_b = jnp.transpose(jnp.broadcast_to(m, (qlen, klen, bsz)), (2, 0, 1))
        mask_add = jnp.where(m_b, jnp.float32(-1e30), jnp.float32(0.0))
    mask_b = mask_add.shape[0]
    mask_index_map = (lambda b, h: (0, 0, 0)) if mask_b == 1 else (lambda b, h: (b, 0, 0))

    ln1g = params["ln1_g"].astype(f32).reshape(1, d_model)
    ln1b = params["ln1_b"].astype(f32).reshape(1, d_model)
    ln2g = params["ln2_g"].astype(f32).reshape(1, d_model)
    ln2b = params["ln2_b"].astype(f32).reshape(1, d_model)
    w1 = params["w1"].astype(bf16)
    b1 = params["b1"].astype(f32).reshape(1, d_inner)
    w2 = params["w2"].astype(bf16)
    b2 = params["b2"].astype(f32).reshape(1, d_model)

    kernel = functools.partial(_fused_layer_kernel, d_head, 1e-5)
    out_bm = pl.pallas_call(
        kernel,
        out_shape=jax.ShapeDtypeStruct((bsz, qlen, d_model), f32),
        grid=(bsz, n_head),
        in_specs=[
            pl.BlockSpec((1, qlen, d_model), lambda b, h: (b, 0, 0)),   # dec_inp
            pl.BlockSpec((1, d_model, 3 * D), lambda b, h: (h, 0, 0)),  # qkv weight (per head)
            pl.BlockSpec((1, 1, D), lambda b, h: (h, 0, 0)),            # r_w_bias (per head)
            pl.BlockSpec((1, klen, D), lambda b, h: (h, 0, 0)),         # r_emb (per head)
            pl.BlockSpec((1, 1, klen), lambda b, h: (h, 0, 0)),         # r_bias (per head)
            pl.BlockSpec((1, qlen, klen), mask_index_map),              # additive mask
            pl.BlockSpec((1, D, d_model), lambda b, h: (h, 0, 0)),      # o_net weight (per head)
            pl.BlockSpec((1, d_model), lambda b, h: (0, 0)),            # ln1 gamma
            pl.BlockSpec((1, d_model), lambda b, h: (0, 0)),            # ln1 beta
            pl.BlockSpec((d_model, d_inner), lambda b, h: (0, 0)),      # FF w1
            pl.BlockSpec((1, d_inner), lambda b, h: (0, 0)),            # FF b1
            pl.BlockSpec((d_inner, d_model), lambda b, h: (0, 0)),      # FF w2
            pl.BlockSpec((1, d_model), lambda b, h: (0, 0)),            # FF b2
            pl.BlockSpec((1, d_model), lambda b, h: (0, 0)),            # ln2 gamma
            pl.BlockSpec((1, d_model), lambda b, h: (0, 0)),            # ln2 beta
        ],
        out_specs=pl.BlockSpec((1, qlen, d_model), lambda b, h: (b, 0, 0)),
        scratch_shapes=[pltpu.VMEM((qlen, d_model), jnp.float32)],
        compiler_params=pltpu.CompilerParams(
            dimension_semantics=("parallel", "arbitrary"),
            vmem_limit_bytes=64 * 1024 * 1024),
    )(w_bm, wqkv_h, r_w_bias_h, r_emb_h, r_bias_h, mask_add, wo_h,
      ln1g, ln1b, w1, b1, w2, b2, ln2g, ln2b)

    return jnp.transpose(out_bm, (1, 0, 2))                    # back to (qlen, bsz, d_model)


# ----------------------------------------------------------------------------
# Pure-JAX reference (mirrors the PyTorch forward) for validation.
# ----------------------------------------------------------------------------
def reference_forward(dec_inp, r_emb, r_w_bias, r_bias, attn_mask3d,
                      params, n_head, d_head, eps=1e-5):
    qlen, bsz, d_model = dec_inp.shape
    scale = 1.0 / (d_head ** 0.5)
    hp = lax.Precision.HIGHEST

    heads = jnp.einsum("qbm,mo->qbo", dec_inp, params["w_qkv"], precision=hp)
    q, k, v = jnp.split(heads, 3, axis=-1)
    klen = k.shape[0]
    q = q.reshape(qlen, bsz, n_head, d_head)
    k = k.reshape(klen, bsz, n_head, d_head)
    v = v.reshape(klen, bsz, n_head, d_head)

    rw_q = q + r_w_bias[None]
    AC = jnp.einsum("ibnd,jbnd->ijbn", rw_q, k, precision=hp)
    B_ = jnp.einsum("ibnd,jnd->ijbn", q, r_emb, precision=hp)
    D_ = r_bias[None, :, None]
    BDpre = B_ + D_

    zp = jnp.zeros((qlen, 1, bsz, n_head), BDpre.dtype)
    xp = jnp.concatenate([zp, BDpre], axis=1).reshape(klen + 1, qlen, bsz, n_head)
    BD = xp[1:].reshape(qlen, klen, bsz, n_head)

    score = (AC + BD) * scale
    score = jnp.where(attn_mask3d[:, :, :, None], -jnp.inf, score)
    prob = jax.nn.softmax(score, axis=1)
    attn_vec = jnp.einsum("ijbn,jbnd->ibnd", prob, v, precision=hp)
    attn_vec = attn_vec.reshape(qlen, bsz, n_head * d_head)
    attn_out = jnp.einsum("qbh,hm->qbm", attn_vec, params["w_o"], precision=hp)

    def ln(x, g, b):
        mu = x.mean(-1, keepdims=True)
        var = ((x - mu) ** 2).mean(-1, keepdims=True)
        return (x - mu) / jnp.sqrt(var + eps) * g + b

    y = ln(dec_inp + attn_out, params["ln1_g"], params["ln1_b"])
    h1 = jax.nn.relu(jnp.einsum("qbm,mi->qbi", y, params["w1"], precision=hp)
                     + params["b1"])
    core = jnp.einsum("qbi,im->qbm", h1, params["w2"], precision=hp) + params["b2"]
    return ln(y + core, params["ln2_g"], params["ln2_b"])


# ----------------------------------------------------------------------------
if __name__ == "__main__":
    n_head, d_model, d_head, d_inner = 2, 32, 16, 64
    qlen, bsz = 8, 2
    klen = qlen

    key = jax.random.PRNGKey(0)
    ks = jax.random.split(key, 12)

    def nrm(k, shape, s=0.05):
        return s * jax.random.normal(k, shape, dtype=jnp.float32)

    dec_inp = nrm(ks[0], (qlen, bsz, d_model), 1.0)
    r_emb = nrm(ks[1], (klen, n_head, d_head), 0.1)
    r_w_bias = nrm(ks[2], (n_head, d_head), 0.1)
    r_bias = nrm(ks[3], (klen, n_head), 0.1)

    params = {
        "w_qkv": nrm(ks[4], (d_model, 3 * n_head * d_head)),   # transposed Linear weight
        "w_o": nrm(ks[5], (n_head * d_head, d_model)),
        "ln1_g": jnp.ones((d_model,), jnp.float32),
        "ln1_b": jnp.zeros((d_model,), jnp.float32),
        "w1": nrm(ks[6], (d_model, d_inner)),
        "b1": nrm(ks[7], (d_inner,)),
        "w2": nrm(ks[8], (d_inner, d_model)),
        "b2": nrm(ks[9], (d_model,)),
        "ln2_g": jnp.ones((d_model,), jnp.float32),
        "ln2_b": jnp.zeros((d_model,), jnp.float32),
    }

    # Causal mask, 3-D as in Transformer-XL: (qlen, klen, 1), True = masked.
    dec_attn_mask = jnp.triu(jnp.ones((qlen, klen), dtype=bool), k=1)[:, :, None]

    out = rel_learnable_decoder_layer(dec_inp, r_emb, r_w_bias, r_bias,
                                      dec_attn_mask, params,
                                      n_head, d_head, d_inner)
    out = jax.block_until_ready(out)

    ref = reference_forward(dec_inp, r_emb, r_w_bias, r_bias, dec_attn_mask,
                            params, n_head, d_head)
    err = float(jnp.max(jnp.abs(out - ref)))
    assert out.shape == (qlen, bsz, d_model)
    assert err < 5e-2, f"max abs error vs reference: {err}"
    print("KERNEL_OK")
</pallas_src>

<mosaic_0001>
module attributes {stable_mosaic.version = 11 : i64} {
  func.func @_fused_layer_kernel(%arg0: i32, %arg1: i32, %arg2: memref<1x8x32xf32, #tpu.memory_space<vmem>>, %arg3: memref<1x32x48xbf16, #tpu.memory_space<vmem>>, %arg4: memref<1x1x16xf32, #tpu.memory_space<vmem>>, %arg5: memref<1x8x16xbf16, #tpu.memory_space<vmem>>, %arg6: memref<1x1x8xf32, #tpu.memory_space<vmem>>, %arg7: memref<1x8x8xf32, #tpu.memory_space<vmem>>, %arg8: memref<1x16x32xbf16, #tpu.memory_space<vmem>>, %arg9: memref<1x32xf32, #tpu.memory_space<vmem>>, %arg10: memref<1x32xf32, #tpu.memory_space<vmem>>, %arg11: memref<32x64xbf16, #tpu.memory_space<vmem>>, %arg12: memref<1x64xf32, #tpu.memory_space<vmem>>, %arg13: memref<64x32xbf16, #tpu.memory_space<vmem>>, %arg14: memref<1x32xf32, #tpu.memory_space<vmem>>, %arg15: memref<1x32xf32, #tpu.memory_space<vmem>>, %arg16: memref<1x32xf32, #tpu.memory_space<vmem>>, %arg17: memref<1x8x32xf32, #tpu.memory_space<vmem>>, %arg18: memref<8x32xf32, #tpu.memory_space<vmem>>) attributes {dimension_semantics = [#tpu.dimension_semantics<parallel>, #tpu.dimension_semantics<arbitrary>], iteration_bounds = array<i64: 2, 2>, scalar_prefetch = 0 : i64, scratch_operands = 1 : i64, tpu.core_type = #tpu.core_type<tc>, window_params = [{transform_indices = @transform_0, window_bounds = array<i64: 1, 8, 32>}, {transform_indices = @transform_1, window_bounds = array<i64: 1, 32, 48>}, {transform_indices = @transform_2, window_bounds = array<i64: 1, 1, 16>}, {transform_indices = @transform_3, window_bounds = array<i64: 1, 8, 16>}, {transform_indices = @transform_4, window_bounds = array<i64: 1, 1, 8>}, {pipeline_mode = #tpu.pipeline_mode<synchronous>, transform_indices = @transform_5, window_bounds = array<i64: 1, 8, 8>}, {transform_indices = @transform_6, window_bounds = array<i64: 1, 16, 32>}, {pipeline_mode = #tpu.pipeline_mode<synchronous>, transform_indices = @transform_7, window_bounds = array<i64: 1, 32>}, {pipeline_mode = #tpu.pipeline_mode<synchronous>, transform_indices = @transform_8, window_bounds = array<i64: 1, 32>}, {pipeline_mode = #tpu.pipeline_mode<synchronous>, transform_indices = @transform_9, window_bounds = array<i64: 32, 64>}, {pipeline_mode = #tpu.pipeline_mode<synchronous>, transform_indices = @transform_10, window_bounds = array<i64: 1, 64>}, {pipeline_mode = #tpu.pipeline_mode<synchronous>, transform_indices = @transform_11, window_bounds = array<i64: 64, 32>}, {pipeline_mode = #tpu.pipeline_mode<synchronous>, transform_indices = @transform_12, window_bounds = array<i64: 1, 32>}, {pipeline_mode = #tpu.pipeline_mode<synchronous>, transform_indices = @transform_13, window_bounds = array<i64: 1, 32>}, {pipeline_mode = #tpu.pipeline_mode<synchronous>, transform_indices = @transform_14, window_bounds = array<i64: 1, 32>}, {transform_indices = @transform_15, window_bounds = array<i64: 1, 8, 32>}]} {
    %c0 = arith.constant 0 : index
    %c0_0 = arith.constant 0 : index
    %c0_1 = arith.constant 0 : index
    %0 = vector.load %arg2[%c0, %c0_0, %c0_1] : memref<1x8x32xf32, #tpu.memory_space<vmem>>, vector<1x8x32xf32>
    %1 = vector.shape_cast %0 : vector<1x8x32xf32> to vector<8x32xf32>
    %c0_i32 = arith.constant 0 : i32
    %2 = arith.cmpi eq, %arg1, %c0_i32 : i32
    %3 = arith.extui %2 : i1 to i32
    %c0_i32_2 = arith.constant 0 : i32
    %4 = arith.cmpi ne, %3, %c0_i32_2 : i32
    scf.if %4 {
      %c0_40 = arith.constant 0 : index
      %c0_41 = arith.constant 0 : index
      %93 = vector.load %arg18[%c0_40, %c0_41] : memref<8x32xf32, #tpu.memory_space<vmem>>, vector<8x32xf32>
      tpu.vector_store %arg18[%c0_40, %c0_41], %1 {strides = array<i32>} : memref<8x32xf32, #tpu.memory_space<vmem>>, vector<8x32xf32>,
    } else {
    }
    %5 = arith.truncf %1 : vector<8x32xf32> to vector<8x32xbf16>
    %c0_3 = arith.constant 0 : index
    %c0_4 = arith.constant 0 : index
    %c0_5 = arith.constant 0 : index
    %6 = vector.load %arg3[%c0_3, %c0_4, %c0_5] : memref<1x32x48xbf16, #tpu.memory_space<vmem>>, vector<1x32x48xbf16>
    %7 = vector.shape_cast %6 : vector<1x32x48xbf16> to vector<32x48xbf16>
    %cst = arith.constant dense<0.000000e+00> : vector<8x48xf32>
    %8 = tpu.matmul %5, %7, %cst {dimension_numbers = #tpu.dot_dimension_numbers<[1], [0], [0], [1], [0, 0, 1, 1], [], []>} : vector<8x32xbf16>, vector<32x48xbf16>, vector<8x48xf32> -> vector<8x48xf32>
    %9 = vector.extract_strided_slice %8 {offsets = [0, 0], sizes = [8, 16], strides = [1, 1]} : vector<8x48xf32> to vector<8x16xf32>
    %10 = vector.extract_strided_slice %8 {offsets = [0, 16], sizes = [8, 16], strides = [1, 1]} : vector<8x48xf32> to vector<8x16xf32>
    %11 = vector.extract_strided_slice %8 {offsets = [0, 32], sizes = [8, 16], strides = [1, 1]} : vector<8x48xf32> to vector<8x16xf32>
    %c0_6 = arith.constant 0 : index
    %c0_7 = arith.constant 0 : index
    %c0_8 = arith.constant 0 : index
    %12 = vector.load %arg4[%c0_6, %c0_7, %c0_8] : memref<1x1x16xf32, #tpu.memory_space<vmem>>, vector<1x1x16xf32>
    %13 = vector.shape_cast %12 : vector<1x1x16xf32> to vector<1x16xf32>
    %14 = vector.broadcast %13 : vector<1x16xf32> to vector<8x16xf32>
    %15 = arith.addf %9, %14 : vector<8x16xf32>
    %16 = arith.truncf %15 : vector<8x16xf32> to vector<8x16xbf16>
    %17 = arith.truncf %10 : vector<8x16xf32> to vector<8x16xbf16>
    %cst_9 = arith.constant dense<0.000000e+00> : vector<8x8xf32>
    %18 = tpu.matmul %16, %17, %cst_9 {dimension_numbers = #tpu.dot_dimension_numbers<[1], [1], [0], [0], [0, 0, 1, 0], [], []>} : vector<8x16xbf16>, vector<8x16xbf16>, vector<8x8xf32> -> vector<8x8xf32>
    %c0_10 = arith.constant 0 : index
    %c0_11 = arith.constant 0 : index
    %c0_12 = arith.constant 0 : index
    %19 = vector.load %arg5[%c0_10, %c0_11, %c0_12] : memref<1x8x16xbf16, #tpu.memory_space<vmem>>, vector<1x8x16xbf16>
    %20 = vector.shape_cast %19 : vector<1x8x16xbf16> to vector<8x16xbf16>
    %21 = arith.truncf %9 : vector<8x16xf32> to vector<8x16xbf16>
    %cst_13 = arith.constant dense<0.000000e+00> : vector<8x8xf32>
    %22 = tpu.matmul %21, %20, %cst_13 {dimension_numbers = #tpu.dot_dimension_numbers<[1], [1], [0], [0], [0, 0, 1, 0], [], []>} : vector<8x16xbf16>, vector<8x16xbf16>, vector<8x8xf32> -> vector<8x8xf32>
    %c0_14 = arith.constant 0 : index
    %c0_15 = arith.constant 0 : index
    %c0_16 = arith.constant 0 : index
    %23 = vector.load %arg6[%c0_14, %c0_15, %c0_16] : memref<1x1x8xf32, #tpu.memory_space<vmem>>, vector<1x1x8xf32>
    %24 = vector.shape_cast %23 : vector<1x1x8xf32> to vector<1x8xf32>
    %25 = vector.broadcast %24 : vector<1x8xf32> to vector<8x8xf32>
    %26 = arith.addf %22, %25 : vector<8x8xf32>
    %27 = tpu.iota {dimensions = array<i32: 0>} : vector<8x1xi32>
    %c7_i32 = arith.constant 7 : i32
    %28 = vector.broadcast %c7_i32 : i32 to vector<8x1xi32>
    %29 = arith.subi %28, %27 : vector<8x1xi32>
    %30 = vector.extract_strided_slice %26 {offsets = [0, 1], sizes = [8, 7], strides = [1, 1]} : vector<8x8xf32> to vector<8x7xf32>
    %31 = vector.extract_strided_slice %26 {offsets = [0, 0], sizes = [8, 1], strides = [1, 1]} : vector<8x8xf32> to vector<8x1xf32>
    %32 = tpu.concatenate %30, %31 in 1 : vector<8x7xf32>, vector<8x1xf32> -> vector<8x8xf32>
    %c0_i32_17 = arith.constant 0 : i32
    %33 = vector.broadcast %c0_i32_17 : i32 to vector<8x1xi32>
    %34 = arith.shrsi %29, %33 : vector<8x1xi32>
    %c1_i32 = arith.constant 1 : i32
    %35 = vector.broadcast %c1_i32 : i32 to vector<8x1xi32>
    %36 = arith.andi %34, %35 : vector<8x1xi32>
    %c1_i32_18 = arith.constant 1 : i32
    %37 = vector.broadcast %c1_i32_18 : i32 to vector<8x1xi32>
    %38 = arith.cmpi eq, %36, %37 : vector<8x1xi32>
    %39 = vector.shape_cast %38 : vector<8x1xi1> to vector<8x1xi1>
    %40 = vector.broadcast %39 : vector<8x1xi1> to vector<8x8xi1>
    %41 = arith.select %40, %32, %26 : vector<8x8xi1>, vector<8x8xf32>
    %42 = vector.extract_strided_slice %41 {offsets = [0, 2], sizes = [8, 6], strides = [1, 1]} : vector<8x8xf32> to vector<8x6xf32>
    %43 = vector.extract_strided_slice %41 {offsets = [0, 0], sizes = [8, 2], strides = [1, 1]} : vector<8x8xf32> to vector<8x2xf32>
    %44 = tpu.concatenate %42, %43 in 1 : vector<8x6xf32>, vector<8x2xf32> -> vector<8x8xf32>
    %c1_i32_19 = arith.constant 1 : i32
    %45 = vector.broadcast %c1_i32_19 : i32 to vector<8x1xi32>
    %46 = arith.shrsi %29, %45 : vector<8x1xi32>
    %c1_i32_20 = arith.constant 1 : i32
    %47 = vector.broadcast %c1_i32_20 : i32 to vector<8x1xi32>
    %48 = arith.andi %46, %47 : vector<8x1xi32>
    %c1_i32_21 = arith.constant 1 : i32
    %49 = vector.broadcast %c1_i32_21 : i32 to vector<8x1xi32>
    %50 = arith.cmpi eq, %48, %49 : vector<8x1xi32>
    %51 = vector.shape_cast %50 : vector<8x1xi1> to vector<8x1xi1>
    %52 = vector.broadcast %51 : vector<8x1xi1> to vector<8x8xi1>
    %53 = arith.select %52, %44, %41 : vector<8x8xi1>, vector<8x8xf32>
    %54 = vector.extract_strided_slice %53 {offsets = [0, 4], sizes = [8, 4], strides = [1, 1]} : vector<8x8xf32> to vector<8x4xf32>
    %55 = vector.extract_strided_slice %53 {offsets = [0, 0], sizes = [8, 4], strides = [1, 1]} : vector<8x8xf32> to vector<8x4xf32>
    %56 = tpu.concatenate %54, %55 in 1 : vector<8x4xf32>, vector<8x4xf32> -> vector<8x8xf32>
    %c2_i32 = arith.constant 2 : i32
    %57 = vector.broadcast %c2_i32 : i32 to vector<8x1xi32>
    %58 = arith.shrsi %29, %57 : vector<8x1xi32>
    %c1_i32_22 = arith.constant 1 : i32
    %59 = vector.broadcast %c1_i32_22 : i32 to vector<8x1xi32>
    %60 = arith.andi %58, %59 : vector<8x1xi32>
    %c1_i32_23 = arith.constant 1 : i32
    %61 = vector.broadcast %c1_i32_23 : i32 to vector<8x1xi32>
    %62 = arith.cmpi eq, %60, %61 : vector<8x1xi32>
    %63 = vector.shape_cast %62 : vector<8x1xi1> to vector<8x1xi1>
    %64 = vector.broadcast %63 : vector<8x1xi1> to vector<8x8xi1>
    %65 = arith.select %64, %56, %53 : vector<8x8xi1>, vector<8x8xf32>
    %66 = arith.addf %18, %65 : vector<8x8xf32>
    %c0_24 = arith.constant 0 : index
    %c0_25 = arith.constant 0 : index
    %c0_26 = arith.constant 0 : index
    %67 = vector.load %arg7[%c0_24, %c0_25, %c0_26] : memref<1x8x8xf32, #tpu.memory_space<vmem>>, vector<1x8x8xf32>
    %68 = vector.shape_cast %67 : vector<1x8x8xf32> to vector<8x8xf32>
    %69 = arith.addf %66, %68 : vector<8x8xf32>
    %cst_27 = arith.constant dense<0xFF800000> : vector<8xf32>
    %70 = vector.multi_reduction <maximumf>, %69, %cst_27 [1] : vector<8x8xf32> to vector<8xf32>
    %71 = vector.shape_cast %70 : vector<8xf32> to vector<8x1xf32>
    %72 = vector.broadcast %71 : vector<8x1xf32> to vector<8x8xf32>
    %73 = arith.subf %69, %72 : vector<8x8xf32>
    %74 = math.exp %73 : vector<8x8xf32>
    %cst_28 = arith.constant dense<0.000000e+00> : vector<8xf32>
    %75 = vector.multi_reduction <add>, %74, %cst_28 [1] : vector<8x8xf32> to vector<8xf32>
    %76 = vector.shape_cast %75 : vector<8xf32> to vector<8x1xf32>
    %77 = arith.truncf %74 : vector<8x8xf32> to vector<8x8xbf16>
    %78 = arith.truncf %11 : vector<8x16xf32> to vector<8x16xbf16>
    %cst_29 = arith.constant dense<0.000000e+00> : vector<8x16xf32>
    %79 = tpu.matmul %77, %78, %cst_29 {dimension_numbers = #tpu.dot_dimension_numbers<[1], [0], [0], [1], [0, 0, 1, 1], [], []>} : vector<8x8xbf16>, vector<8x16xbf16>, vector<8x16xf32> -> vector<8x16xf32>
    %80 = tpu.reciprocal %76 {approx = true} : vector<8x1xf32> -> vector<8x1xf32>
    %81 = vector.broadcast %80 : vector<8x1xf32> to vector<8x16xf32>
    %82 = arith.mulf %79, %81 : vector<8x16xf32>
    %c0_30 = arith.constant 0 : index
    %c0_31 = arith.constant 0 : index
    %83 = vector.load %arg18[%c0_30, %c0_31] : memref<8x32xf32, #tpu.memory_space<vmem>>, vector<8x32xf32>
    %84 = arith.truncf %82 : vector<8x16xf32> to vector<8x16xbf16>
    %c0_32 = arith.constant 0 : index
    %c0_33 = arith.constant 0 : index
    %c0_34 = arith.constant 0 : index
    %85 = vector.load %arg8[%c0_32, %c0_33, %c0_34] : memref<1x16x32xbf16, #tpu.memory_space<vmem>>, vector<1x16x32xbf16>
    %86 = vector.shape_cast %85 : vector<1x16x32xbf16> to vector<16x32xbf16>
    %cst_35 = arith.constant dense<0.000000e+00> : vector<8x32xf32>
    %87 = tpu.matmul %84, %86, %cst_35 {dimension_numbers = #tpu.dot_dimension_numbers<[1], [0], [0], [1], [0, 0, 1, 1], [], []>} : vector<8x16xbf16>, vector<16x32xbf16>, vector<8x32xf32> -> vector<8x32xf32>
    %88 = arith.addf %83, %87 : vector<8x32xf32>
    %c0_36 = arith.constant 0 : index
    %c0_37 = arith.constant 0 : index
    %89 = vector.load %arg18[%c0_36, %c0_37] : memref<8x32xf32, #tpu.memory_space<vmem>>, vector<8x32xf32>
    tpu.vector_store %arg18[%c0_36, %c0_37], %88 {strides = array<i32>} : memref<8x32xf32, #tpu.memory_space<vmem>>, vector<8x32xf32>,
    %c1_i32_38 = arith.constant 1 : i32
    %90 = arith.cmpi eq, %arg1, %c1_i32_38 : i32
    %91 = arith.extui %90 : i1 to i32
    %c0_i32_39 = arith.constant 0 : i32
    %92 = arith.cmpi ne, %91, %c0_i32_39 : i32
    scf.if %92 {
      %c0_40 = arith.constant 0 : index
      %c0_41 = arith.constant 0 : index
      %93 = vector.load %arg18[%c0_40, %c0_41] : memref<8x32xf32, #tpu.memory_space<vmem>>, vector<8x32xf32>
      %c0_42 = arith.constant 0 : index
      %c0_43 = arith.constant 0 : index
      %94 = vector.load %arg9[%c0_42, %c0_43] : memref<1x32xf32, #tpu.memory_space<vmem>>, vector<1x32xf32>
      %c0_44 = arith.constant 0 : index
      %c0_45 = arith.constant 0 : index
      %95 = vector.load %arg10[%c0_44, %c0_45] : memref<1x32xf32, #tpu.memory_space<vmem>>, vector<1x32xf32>
      %cst_46 = arith.constant dense<0.000000e+00> : vector<8xf32>
      %96 = vector.multi_reduction <add>, %93, %cst_46 [1] : vector<8x32xf32> to vector<8xf32>
      %97 = vector.shape_cast %96 : vector<8xf32> to vector<8x1xf32>
      %cst_47 = arith.constant 3.200000e+01 : f32
      %98 = vector.broadcast %cst_47 : f32 to vector<8x1xf32>
      %99 = arith.divf %97, %98 : vector<8x1xf32>
      %100 = vector.broadcast %99 : vector<8x1xf32> to vector<8x32xf32>
      %101 = arith.subf %93, %100 : vector<8x32xf32>
      %102 = arith.mulf %101, %101 : vector<8x32xf32>
      %cst_48 = arith.constant dense<0.000000e+00> : vector<8xf32>
      %103 = vector.multi_reduction <add>, %102, %cst_48 [1] : vector<8x32xf32> to vector<8xf32>
      %104 = vector.shape_cast %103 : vector<8xf32> to vector<8x1xf32>
      %cst_49 = arith.constant 3.200000e+01 : f32
      %105 = vector.broadcast %cst_49 : f32 to vector<8x1xf32>
      %106 = arith.divf %104, %105 : vector<8x1xf32>
      %107 = vector.broadcast %99 : vector<8x1xf32> to vector<8x32xf32>
      %108 = arith.subf %93, %107 : vector<8x32xf32>
      %cst_50 = arith.constant 9.99999974E-6 : f32
      %109 = vector.broadcast %cst_50 : f32 to vector<8x1xf32>
      %110 = arith.addf %106, %109 : vector<8x1xf32>
      %111 = math.rsqrt %110 : vector<8x1xf32>
      %112 = vector.broadcast %111 : vector<8x1xf32> to vector<8x32xf32>
      %113 = arith.mulf %108, %112 : vector<8x32xf32>
      %114 = vector.broadcast %94 : vector<1x32xf32> to vector<8x32xf32>
      %115 = arith.mulf %113, %114 : vector<8x32xf32>
      %116 = vector.broadcast %95 : vector<1x32xf32> to vector<8x32xf32>
      %117 = arith.addf %115, %116 : vector<8x32xf32>
      %118 = arith.truncf %117 : vector<8x32xf32> to vector<8x32xbf16>
      %c0_51 = arith.constant 0 : index
      %c0_52 = arith.constant 0 : index
      %119 = vector.load %arg11[%c0_51, %c0_52] : memref<32x64xbf16, #tpu.memory_space<vmem>>, vector<32x64xbf16>
      %cst_53 = arith.constant dense<0.000000e+00> : vector<8x64xf32>
      %120 = tpu.matmul %118, %119, %cst_53 {dimension_numbers = #tpu.dot_dimension_numbers<[1], [0], [0], [1], [0, 0, 1, 1], [], []>} : vector<8x32xbf16>, vector<32x64xbf16>, vector<8x64xf32> -> vector<8x64xf32>
      %c0_54 = arith.constant 0 : index
      %c0_55 = arith.constant 0 : index
      %121 = vector.load %arg12[%c0_54, %c0_55] : memref<1x64xf32, #tpu.memory_space<vmem>>, vector<1x64xf32>
      %122 = vector.broadcast %121 : vector<1x64xf32> to vector<8x64xf32>
      %123 = arith.addf %120, %122 : vector<8x64xf32>
      %cst_56 = arith.constant 0.000000e+00 : f32
      %124 = vector.broadcast %cst_56 : f32 to vector<8x64xf32>
      %125 = arith.maximumf %123, %124 : vector<8x64xf32>
      %126 = arith.truncf %125 : vector<8x64xf32> to vector<8x64xbf16>
      %c0_57 = arith.constant 0 : index
      %c0_58 = arith.constant 0 : index
      %127 = vector.load %arg13[%c0_57, %c0_58] : memref<64x32xbf16, #tpu.memory_space<vmem>>, vector<64x32xbf16>
      %cst_59 = arith.constant dense<0.000000e+00> : vector<8x32xf32>
      %128 = tpu.matmul %126, %127, %cst_59 {dimension_numbers = #tpu.dot_dimension_numbers<[1], [0], [0], [1], [0, 0, 1, 1], [], []>} : vector<8x64xbf16>, vector<64x32xbf16>, vector<8x32xf32> -> vector<8x32xf32>
      %c0_60 = arith.constant 0 : index
      %c0_61 = arith.constant 0 : index
      %129 = vector.load %arg14[%c0_60, %c0_61] : memref<1x32xf32, #tpu.memory_space<vmem>>, vector<1x32xf32>
      %130 = vector.broadcast %129 : vector<1x32xf32> to vector<8x32xf32>
      %131 = arith.addf %128, %130 : vector<8x32xf32>
      %132 = arith.addf %117, %131 : vector<8x32xf32>
      %c0_62 = arith.constant 0 : index
      %c0_63 = arith.constant 0 : index
      %133 = vector.load %arg15[%c0_62, %c0_63] : memref<1x32xf32, #tpu.memory_space<vmem>>, vector<1x32xf32>
      %c0_64 = arith.constant 0 : index
      %c0_65 = arith.constant 0 : index
      %134 = vector.load %arg16[%c0_64, %c0_65] : memref<1x32xf32, #tpu.memory_space<vmem>>, vector<1x32xf32>
      %cst_66 = arith.constant dense<0.000000e+00> : vector<8xf32>
      %135 = vector.multi_reduction <add>, %132, %cst_66 [1] : vector<8x32xf32> to vector<8xf32>
      %136 = vector.shape_cast %135 : vector<8xf32> to vector<8x1xf32>
      %cst_67 = arith.constant 3.200000e+01 : f32
      %137 = vector.broadcast %cst_67 : f32 to vector<8x1xf32>
      %138 = arith.divf %136, %137 : vector<8x1xf32>
      %139 = vector.broadcast %138 : vector<8x1xf32> to vector<8x32xf32>
      %140 = arith.subf %132, %139 : vector<8x32xf32>
      %141 = arith.mulf %140, %140 : vector<8x32xf32>
      %cst_68 = arith.constant dense<0.000000e+00> : vector<8xf32>
      %142 = vector.multi_reduction <add>, %141, %cst_68 [1] : vector<8x32xf32> to vector<8xf32>
      %143 = vector.shape_cast %142 : vector<8xf32> to vector<8x1xf32>
      %cst_69 = arith.constant 3.200000e+01 : f32
      %144 = vector.broadcast %cst_69 : f32 to vector<8x1xf32>
      %145 = arith.divf %143, %144 : vector<8x1xf32>
      %146 = vector.broadcast %138 : vector<8x1xf32> to vector<8x32xf32>
      %147 = arith.subf %132, %146 : vector<8x32xf32>
      %cst_70 = arith.constant 9.99999974E-6 : f32
      %148 = vector.broadcast %cst_70 : f32 to vector<8x1xf32>
      %149 = arith.addf %145, %148 : vector<8x1xf32>
      %150 = math.rsqrt %149 : vector<8x1xf32>
      %151 = vector.broadcast %150 : vector<8x1xf32> to vector<8x32xf32>
      %152 = arith.mulf %147, %151 : vector<8x32xf32>
      %153 = vector.broadcast %133 : vector<1x32xf32> to vector<8x32xf32>
      %154 = arith.mulf %152, %153 : vector<8x32xf32>
      %155 = vector.broadcast %134 : vector<1x32xf32> to vector<8x32xf32>
      %156 = arith.addf %154, %155 : vector<8x32xf32>
      %c0_71 = arith.constant 0 : index
      %c0_72 = arith.constant 0 : index
      %c0_73 = arith.constant 0 : index
      %157 = vector.load %arg17[%c0_71, %c0_72, %c0_73] : memref<1x8x32xf32, #tpu.memory_space<vmem>>, vector<1x8x32xf32>
      %158 = vector.shape_cast %157 : vector<1x8x32xf32> to vector<8x32xf32>
      %159 = vector.shape_cast %156 : vector<8x32xf32> to vector<1x8x32xf32>
      tpu.vector_store %arg17[%c0_71, %c0_72, %c0_73], %159 {strides = array<i32>} : memref<1x8x32xf32, #tpu.memory_space<vmem>>, vector<1x8x32xf32>,
    } else {
    }
    return
  }
  func.func @transform_0(%arg0: i32, %arg1: i32) -> (i32, i32, i32) {
    %c0_i32 = arith.constant 0 : i32
    %c0_i32_0 = arith.constant 0 : i32
    %c0_i32_1 = arith.constant 0 : i32
    return %arg0, %c0_i32, %c0_i32_0 : i32, i32, i32
  }
  func.func @transform_1(%arg0: i32, %arg1: i32) -> (i32, i32, i32) {
    %c0_i32 = arith.constant 0 : i32
    %c0_i32_0 = arith.constant 0 : i32
    %c0_i32_1 = arith.constant 0 : i32
    return %arg1, %c0_i32, %c0_i32_0 : i32, i32, i32
  }
  func.func @transform_2(%arg0: i32, %arg1: i32) -> (i32, i32, i32) {
    %c0_i32 = arith.constant 0 : i32
    %c0_i32_0 = arith.constant 0 : i32
    %c0_i32_1 = arith.constant 0 : i32
    return %arg1, %c0_i32, %c0_i32_0 : i32, i32, i32
  }
  func.func @transform_3(%arg0: i32, %arg1: i32) -> (i32, i32, i32) {
    %c0_i32 = arith.constant 0 : i32
    %c0_i32_0 = arith.constant 0 : i32
    %c0_i32_1 = arith.constant 0 : i32
    return %arg1, %c0_i32, %c0_i32_0 : i32, i32, i32
  }
  func.func @transform_4(%arg0: i32, %arg1: i32) -> (i32, i32, i32) {
    %c0_i32 = arith.constant 0 : i32
    %c0_i32_0 = arith.constant 0 : i32
    %c0_i32_1 = arith.constant 0 : i32
    return %arg1, %c0_i32, %c0_i32_0 : i32, i32, i32
  }
  func.func @transform_5(%arg0: i32, %arg1: i32) -> (i32, i32, i32) {
    %c0_i32 = arith.constant 0 : i32
    %c0_i32_0 = arith.constant 0 : i32
    %c0_i32_1 = arith.constant 0 : i32
    %c0_i32_2 = arith.constant 0 : i32
    return %c0_i32, %c0_i32_0, %c0_i32_1 : i32, i32, i32
  }
  func.func @transform_6(%arg0: i32, %arg1: i32) -> (i32, i32, i32) {
    %c0_i32 = arith.constant 0 : i32
    %c0_i32_0 = arith.constant 0 : i32
    %c0_i32_1 = arith.constant 0 : i32
    return %arg1, %c0_i32, %c0_i32_0 : i32, i32, i32
  }
  func.func @transform_7(%arg0: i32, %arg1: i32) -> (i32, i32) {
    %c0_i32 = arith.constant 0 : i32
    %c0_i32_0 = arith.constant 0 : i32
    %c0_i32_1 = arith.constant 0 : i32
    return %c0_i32, %c0_i32_0 : i32, i32
  }
  func.func @transform_8(%arg0: i32, %arg1: i32) -> (i32, i32) {
    %c0_i32 = arith.constant 0 : i32
    %c0_i32_0 = arith.constant 0 : i32
    %c0_i32_1 = arith.constant 0 : i32
    return %c0_i32, %c0_i32_0 : i32, i32
  }
  func.func @transform_9(%arg0: i32, %arg1: i32) -> (i32, i32) {
    %c0_i32 = arith.constant 0 : i32
    %c0_i32_0 = arith.constant 0 : i32
    %c0_i32_1 = arith.constant 0 : i32
    return %c0_i32, %c0_i32_0 : i32, i32
  }
  func.func @transform_10(%arg0: i32, %arg1: i32) -> (i32, i32) {
    %c0_i32 = arith.constant 0 : i32
    %c0_i32_0 = arith.constant 0 : i32
    %c0_i32_1 = arith.constant 0 : i32
    return %c0_i32, %c0_i32_0 : i32, i32
  }
  func.func @transform_11(%arg0: i32, %arg1: i32) -> (i32, i32) {
    %c0_i32 = arith.constant 0 : i32
    %c0_i32_0 = arith.constant 0 : i32
    %c0_i32_1 = arith.constant 0 : i32
    return %c0_i32, %c0_i32_0 : i32, i32
  }
  func.func @transform_12(%arg0: i32, %arg1: i32) -> (i32, i32) {
    %c0_i32 = arith.constant 0 : i32
    %c0_i32_0 = arith.constant 0 : i32
    %c0_i32_1 = arith.constant 0 : i32
    return %c0_i32, %c0_i32_0 : i32, i32
  }
  func.func @transform_13(%arg0: i32, %arg1: i32) -> (i32, i32) {
    %c0_i32 = arith.constant 0 : i32
    %c0_i32_0 = arith.constant 0 : i32
    %c0_i32_1 = arith.constant 0 : i32
    return %c0_i32, %c0_i32_0 : i32, i32
  }
  func.func @transform_14(%arg0: i32, %arg1: i32) -> (i32, i32) {
    %c0_i32 = arith.constant 0 : i32
    %c0_i32_0 = arith.constant 0 : i32
    %c0_i32_1 = arith.constant 0 : i32
    return %c0_i32, %c0_i32_0 : i32, i32
  }
  func.func @transform_15(%arg0: i32, %arg1: i32) -> (i32, i32, i32) {
    %c0_i32 = arith.constant 0 : i32
    %c0_i32_0 = arith.constant 0 : i32
    %c0_i32_1 = arith.constant 0 : i32
    return %arg0, %c0_i32, %c0_i32_0 : i32, i32, i32
  }
}

</mosaic_0001>

<bundles_post_ra>
// kernel: tpu_custom_call.1
= control target key start
LH: loop header
LB: loop body
LE: loop exit
PB: predicated region body
PF: predicated region fallthrough
CT: control target
= control target key end

     0   :  { %s3485_s0 = inlined_call_operand.hbm [shape: f32[2,8,32], index: 0, kind: input, shape index: {}]   ;;  %s3486_s1 = inlined_call_operand.hbm [shape: bf16[2,32,48], index: 1, kind: input, shape index: {}]   ;;  %s3487_s2 = inlined_call_operand.hbm [shape: f32[2,1,16], index: 2, kind: input, shape index: {}]   ;;  %s3488_s3 = inlined_call_operand.hbm [shape: bf16[2,8,16], index: 3, kind: input, shape index: {}]   ;;  %s3489_s4 = inlined_call_operand.hbm [shape: f32[2,1,8], index: 4, kind: input, shape index: {}]   ;;  %s3490_s5 = inlined_call_operand.hbm [shape: f32[1,8,8], index: 5, kind: input, shape index: {}]   ;;  %s3491_s6 = inlined_call_operand.hbm [shape: bf16[2,16,32], index: 6, kind: input, shape index: {}]   ;;  %s3492_s7 = inlined_call_operand.hbm [shape: f32[1,32], index: 7, kind: input, shape index: {}]   ;;  %s3493_s8 = inlined_call_operand.hbm [shape: f32[1,32], index: 8, kind: input, shape index: {}]   ;;  %s3494_s9 = inlined_call_operand.hbm [shape: bf16[32,64], index: 9, kind: input, shape index: {}]   ;;  %s3495_s10 = inlined_call_operand.hbm [shape: f32[1,64], index: 10, kind: input, shape index: {}]   ;;  %s3496_s11 = inlined_call_operand.hbm [shape: bf16[64,32], index: 11, kind: input, shape index: {}]   ;;  %s3497_s12 = inlined_call_operand.hbm [shape: f32[1,32], index: 12, kind: input, shape index: {}]   ;;  %s3498_s13 = inlined_call_operand.hbm [shape: f32[1,32], index: 13, kind: input, shape index: {}]   ;;  %s3499_s14 = inlined_call_operand.hbm [shape: f32[1,32], index: 14, kind: input, shape index: {}]   ;;  %s3500_s15 = inlined_call_operand.hbm [shape: f32[2,8,32], index: 15, kind: output, shape index: {}]  }
   0x1   :  { %3539 = sst [smem:[#allocation51_spill]] %s3485_s0 }
   0x2   :  { %3540 = sst [smem:[#allocation52_spill]] %s3486_s1 }
   0x3   :  { %3541 = sst [smem:[#allocation53_spill]] %s3487_s2 }
   0x4   :  { %3542 = sst [smem:[#allocation54_spill]] %s3488_s3 }
   0x5   :  { %3543 = sst [smem:[#allocation55_spill]] %s3489_s4 }
   0x6   :  { %3544 = sst [smem:[#allocation56_spill]] %s3490_s5 }
   0x7   :  { %3545 = sst [smem:[#allocation57_spill]] %s3491_s6 }
   0x8   :  { %3546 = sst [smem:[#allocation58_spill]] %s3492_s7 }
   0x9   :  { %3547 = sst [smem:[#allocation59_spill]] %s3493_s8 }
   0xa   :  { %3548 = sst [smem:[#allocation60_spill]] %s3494_s9 }
   0xb   :  { %3549 = sst [smem:[#allocation61_spill]] %s3495_s10 }
   0xc   :  { %3550 = sst [smem:[#allocation62_spill]] %s3496_s11 }
   0xd   :  { %3551 = sst [smem:[#allocation63_spill]] %s3497_s12 }
   0xe   :  { %3552 = sst [smem:[#allocation64_spill]] %s3498_s13 }
   0xf   :  { %3553 = sst [smem:[#allocation65_spill]] %s3499_s14 }
  0x10   :  { %3554 = sst [smem:[#allocation66_spill]] %s3500_s15 }
  0x11   :  { %20 = vsyncpa [#allocation4], 0 }
  0x12   :  { %22 = vsyncpa [#allocation4 + $0x1], 0 }
  0x13   :  { %23 = vsyncpa [#allocation7], 0 }
  0x14   :  { %25 = vsyncpa [#allocation7 + $0x1], 0 }
  0x15   :  { %26 = vsyncpa [#allocation10], 0 }
  0x16   :  { %28 = vsyncpa [#allocation10 + $0x1], 0 }
  0x17   :  { %29 = vsyncpa [#allocation13], 0 }
  0x18   :  { %30 = vsyncpa [#allocation19], 0 }
  0x19   :  { %31 = vsyncpa [#allocation22], 0 }
  0x1a   :  { %32 = vsyncpa [#allocation25], 0 }
  0x1b   :  { %33 = vsyncpa [#allocation5], 0 }
  0x1c   :  { %35 = vsyncpa [#allocation5 + $0x1], 0  ;;  %s2759_s18 = smov 0   ;;  %s2761_s19 = smov 0  }
  0x1d   :  { %s2763_s20 = smov 0   ;;  %s2765_s21 = smov 0  }
  0x1e   :  { %s2767_s22 = smov 0   ;;  %s2769_s23 = smov 0  }
  0x1f   :  { %s2771_s24 = smov 0   ;;  %s2773_s25 = smov 0  }
  0x20   :  { %s2775_s26 = smov 0   ;;  %s2777_s27 = smov 0  }
  0x21   :  { %s2779_s28 = smov 0  }
  0x22 LB: > { %3555 = sst [smem:[#allocation39_spill]] %s2615_s20  ;;  %s2649_s29 = smov [#allocation15]   ;;  %s2647_s28 = sphi %s2779_s28, %s41_s28   ;;  %s2643_s27 = sphi %s2777_s27, %s3651_s27   ;;  %s2639_s26 = sphi %s2775_s26, %s3650_s26   ;;  %s2635_s25 = sphi %s2773_s25, %s3641_s25   ;;  %s2631_s24 = sphi %s2771_s24, %s3649_s24   ;;  %s2627_s23 = sphi %s2769_s23, %s3640_s23   ;;  %s2623_s22 = sphi %s2767_s22, %s3648_s22   ;;  %s2619_s21 = sphi %s2765_s21, %s3647_s21   ;;  %s2615_s20 = sphi %s2763_s20, %s3646_s20   ;;  %s2611_s19 = sphi %s2761_s19, %s3645_s19   ;;  %s2607_s18 = sphi %s2759_s18, %s3644_s18  }
  0x23   : > { %3556 = sst [smem:[#allocation40_spill]] %s2619_s21  ;;  %s453_s30 = sshll.u32 %s2649_s29, 4  ;;  %s454_s30 = int_to_ptr.vmem [resolvable:$true] %s453_s30 }
  0x24   : > { %3557 = sst [smem:[#allocation41_spill]] %s2627_s23  ;;  %s2815_s16 = sadd.s32 4294967295, %s2647_s28  }
  0x25   : > { %3558 = sst [smem:[#allocation42_spill]] %s2631_s24  ;;  %p1663_p0 = scmp.ge.s32.totalorder %s2647_s28, 1 }
  0x26   : > { %3559 = sst [smem:[#allocation43_spill]] %s2635_s25  ;;  %p3509_p1 = scmp.eq.s32.totalorder %s2815_s16, 0 }
  0x27   : > { %3560 = sst [smem:[#allocation44_spill]] %s2643_s27  ;;  %p429_p2 = scmp.lt.s32.totalorder %s2647_s28, 5 }
  0x28   : > { %s2650_s15 = smov [#allocation16]   ;;  %s2651_s24 = smov [#allocation12]  }
  0x29   : > { %p2820_p3 = pnand %p1663_p0, %p429_p2  ;;  %s464_s25 = sshll.u32 %s2650_s15, 4  ;;  %s2826_s25 = int_to_ptr.vmem [resolvable:$true] %s464_s25 }
  0x2a   : > { %s2834_s6 = sshll.u32 %s2651_s24, 4  ;;  %s3564_s7 = sld [smem:[#allocation58_spill]]  ;;  %s443_s6 = int_to_ptr.vmem [resolvable:$true] %s2834_s6 }
  0x2b   : > { %s3561_s17 = scalar_select %p2820_p3, 1, 0 }
  0x2c   : > { %p1854_p4 = pneg %p2820_p3 }
  0x2d   : > { %3562 = sst [smem:[#allocation45_spill]] %s3561_s17 }
  0x2e   : > { %p2830_p5 = pnand %p1854_p4, %p3509_p1 }
  0x30   : > { %s3563_s29 = scalar_select %p2830_p5, 1, 0 }
  0x31   : > { %s2053_s14 = scalar_lea.hbm %s3564_s7, 16  ;;  %p2844_p7 = pneg %p2830_p5 }
  0x32   : > { %p2054_p6 = scmp.ne.s32.totalorder %s3564_s7, %s2053_s14  ;;  %p2060_p10 = scmp.lt.u32.totalorder %s2053_s14, %s3564_s7 }
  0x33   : > { %s3565_s15 = scalar_select %p2844_p7, 1, 0 }
  0x34   : > { %p2056_p8 = pnand %p2844_p7, %p2054_p6 }
  0x36   : > { %p2057_p9 = pneg %p2056_p8 }
  0x38   : > { %p2062_p11 = pnand %p2060_p10, %p2057_p9 }
  0x3a   : > { %2065 = shalt.err (!%p2062_p11)
}
  0x3b   : > { %s2066_s2 = scalar_lea.vmem %s454_s30, 16  ;;  %s2073_s4 = scalar_lea.vmem %s454_s30, 32 }
  0x3c   : > { %p2067_p12 = scmp.ne.s32.totalorder %s454_s30, %s2066_s2  ;;  %p2074_p2 = scmp.lt.s32.totalorder %s454_s30, %s454_s30 }
  0x3d   : > { %p2075_p4 = scmp.lt.s32.totalorder %s2073_s4, %s2066_s2 }
  0x3e   : > { %p2069_p13 = pnand %p2067_p12, %p2844_p7 }
  0x3f   : > { %p2076_p1 = por %p2075_p4, %p2074_p2 }
  0x40   : > { %p2070_p0 = pneg %p2069_p13 }
  0x42   : > { %p2077_p3 = pnand %p2076_p1, %p2070_p0 }
  0x44   : > { %2080 = shalt.err (!%p2077_p3)
}
  0x45   : > { %1860 = dma.hbm_to_vmem [thread:$0]  (!%p2830_p5), %s3564_s7, 16, %s454_s30, [#allocation7]  }
  0x46   : > { %s3566_s8 = sld [smem:[#allocation59_spill]] }
  0x4c   : > { %s2081_s24 = scalar_lea.hbm %s3566_s8, 16 }
  0x4d   : > { %p2082_p6 = scmp.ne.s32.totalorder %s3566_s8, %s2081_s24  ;;  %p2088_p1 = scmp.lt.u32.totalorder %s2081_s24, %s3566_s8 }
  0x4f   : > { %p2084_p8 = pnand %p2082_p6, %p2844_p7 }
  0x51   : > { %p2085_p9 = pneg %p2084_p8 }
  0x53   : > { %p2090_p3 = pnand %p2088_p1, %p2085_p9 }
  0x55   : > { %2093 = shalt.err (!%p2090_p3)
}
  0x56   : > { %s2094_s30 = scalar_lea.vmem %s2826_s25, 16  ;;  %s2101_s3 = scalar_lea.vmem %s2826_s25, 32 }
  0x57   : > { %p2095_p10 = scmp.ne.s32.totalorder %s2826_s25, %s2094_s30  ;;  %p2102_p13 = scmp.lt.s32.totalorder %s2826_s25, %s2826_s25 }
  0x58   : > { %p2103_p0 = scmp.lt.s32.totalorder %s2101_s3, %s2094_s30 }
  0x59   : > { %p2097_p11 = pnand %p2095_p10, %p2844_p7 }
  0x5a   : > { %p2104_p2 = por %p2103_p0, %p2102_p13 }
  0x5b   : > { %p2098_p12 = pneg %p2097_p11 }
  0x5d   : > { %p2105_p4 = pnand %p2104_p2, %p2098_p12 }
  0x5f   : > { %2108 = shalt.err (!%p2105_p4)
}
  0x60   : > { %1863 = dma.hbm_to_vmem [thread:$0]  (!%p2830_p5), %s3566_s8, 16, %s2826_s25, [#allocation10]  }
  0x61   : > { %s3567_s5 = sld [smem:[#allocation56_spill]] }
  0x67   : > { %s2109_s14 = scalar_lea.hbm %s3567_s5, 128 }
  0x68   : > { %p2110_p6 = scmp.ne.s32.totalorder %s3567_s5, %s2109_s14  ;;  %p2116_p1 = scmp.lt.u32.totalorder %s2109_s14, %s3567_s5 }
  0x6a   : > { %p2112_p8 = pnand %p2110_p6, %p2844_p7 }
  0x6c   : > { %p2113_p9 = pneg %p2112_p8 }
  0x6e   : > { %p2118_p3 = pnand %p2116_p1, %p2113_p9 }
  0x70   : > { %2121 = shalt.err (!%p2118_p3)
}
  0x71   : > { %s2122_s3 = scalar_lea.vmem %s443_s6, 128  ;;  %p2130_p13 = scmp.lt.s32.totalorder %s443_s6, %s443_s6 }
  0x72   : > { %p2123_p10 = scmp.ne.s32.totalorder %s443_s6, %s2122_s3  ;;  %p2131_p0 = scmp.lt.s32.totalorder %s2122_s3, %s2122_s3 }
  0x74   : > { %p2125_p11 = pnand %p2123_p10, %p2844_p7  ;;  %p2132_p2 = por %p2131_p0, %p2130_p13 }
  0x76   : > { %p2126_p12 = pneg %p2125_p11 }
  0x78   : > { %p2133_p4 = pnand %p2132_p2, %p2126_p12 }
  0x7a   : > { %2136 = shalt.err (!%p2133_p4)
}
  0x7b   : > { %1857 = dma.hbm_to_vmem [thread:$0]  (!%p2830_p5), %s3567_s5, 128, %s443_s6, [#allocation13]  }
  0x7c   : > { %s2652_s13 = smov [#allocation18]   ;;  %s2653_s11 = smov [#allocation21]  }
  0x7d   : > { %s488_s17 = sshll.u32 %s2652_s13, 4  ;;  %s512_s14 = sshll.u32 %s2653_s11, 4  ;;  %s489_s17 = int_to_ptr.vmem [resolvable:$true] %s488_s17  ;;  %s513_s14 = int_to_ptr.vmem [resolvable:$true] %s512_s14 }
  0x7e   : > { %s3568_s10 = sld [smem:[#allocation61_spill]] }
  0x84   : > { %s2137_s4 = scalar_lea.hbm %s3568_s10, 16 }
  0x85   : > { %p2138_p6 = scmp.ne.s32.totalorder %s3568_s10, %s2137_s4  ;;  %p2144_p1 = scmp.lt.u32.totalorder %s2137_s4, %s3568_s10 }
  0x87   : > { %p2140_p8 = pnand %p2138_p6, %p2844_p7 }
  0x89   : > { %p2141_p9 = pneg %p2140_p8 }
  0x8b   : > { %p2146_p3 = pnand %p2144_p1, %p2141_p9 }
  0x8d   : > { %2149 = shalt.err (!%p2146_p3)
}
  0x8e   : > { %s2150_s6 = scalar_lea.vmem %s489_s17, 16  ;;  %s2157_s9 = scalar_lea.vmem %s489_s17, 32 }
  0x8f   : > { %p2151_p10 = scmp.ne.s32.totalorder %s489_s17, %s2150_s6  ;;  %p2158_p13 = scmp.lt.s32.totalorder %s489_s17, %s489_s17 }
  0x90   : > { %p2159_p0 = scmp.lt.s32.totalorder %s2157_s9, %s2150_s6 }
  0x91   : > { %p2153_p11 = pnand %p2151_p10, %p2844_p7 }
  0x92   : > { %p2160_p2 = por %p2159_p0, %p2158_p13 }
  0x93   : > { %p2154_p12 = pneg %p2153_p11 }
  0x95   : > { %p2161_p4 = pnand %p2160_p2, %p2154_p12 }
  0x97   : > { %2164 = shalt.err (!%p2161_p4)
}
  0x98   : > { %1869 = dma.hbm_to_vmem [thread:$0]  (!%p2830_p5), %s3568_s10, 16, %s489_s17, [#allocation19]  }
  0x99   : > { %s3569_s12 = sld [smem:[#allocation63_spill]] }
  0x9f   : > { %s2165_s2 = scalar_lea.hbm %s3569_s12, 16 }
  0xa0   : > { %p2166_p6 = scmp.ne.s32.totalorder %s3569_s12, %s2165_s2  ;;  %p2172_p1 = scmp.lt.u32.totalorder %s2165_s2, %s3569_s12 }
  0xa2   : > { %p2168_p8 = pnand %p2166_p6, %p2844_p7 }
  0xa4   : > { %p2169_p9 = pneg %p2168_p8 }
  0xa6   : > { %p2174_p3 = pnand %p2172_p1, %p2169_p9 }
  0xa8   : > { %2177 = shalt.err (!%p2174_p3)
}
  0xa9   : > { %s2178_s6 = scalar_lea.vmem %s513_s14, 16  ;;  %s2185_s17 = scalar_lea.vmem %s513_s14, 32 }
  0xaa   : > { %p2179_p10 = scmp.ne.s32.totalorder %s513_s14, %s2178_s6  ;;  %p2186_p13 = scmp.lt.s32.totalorder %s513_s14, %s513_s14 }
  0xab   : > { %p2187_p0 = scmp.lt.s32.totalorder %s2185_s17, %s2178_s6 }
  0xac   : > { %p2181_p11 = pnand %p2179_p10, %p2844_p7 }
  0xad   : > { %p2188_p2 = por %p2187_p0, %p2186_p13 }
  0xae   : > { %p2182_p12 = pneg %p2181_p11 }
  0xb0   : > { %p2189_p4 = pnand %p2188_p2, %p2182_p12 }
  0xb2   : > { %2192 = shalt.err (!%p2189_p4)
}
  0xb3   : > { %1875 = dma.hbm_to_vmem [thread:$0]  (!%p2830_p5), %s3569_s12, 16, %s513_s14, [#allocation22]  }
  0xb4   : > { %s1662_s11 = sadd.s32 4294967294, %s2647_s28   ;;  %s50_s7 = sadd.s32 1, %s2639_s26 }
  0xb5   : > { %s53_s24 = sadd.s32 1, %s2643_s27  ;;  %p51_p6 = scmp.ge.s32.totalorder %s50_s7, 2 }
  0xb6   : > { %s60_s2 = sadd.s32 1, %s2627_s23  ;;  %p3514_p8 = scmp.ne.s32.totalorder %s2627_s23, %s2623_s22 }
  0xb7   : > { %p68_p9 = scmp.eq.s32.totalorder %s2647_s28, 0  ;;  %s3653_s7 = smov (%p51_p6, %s50_s7), 0 }
  0xb8   : > { %3570 = sst [smem:[#allocation46_spill]] %s3653_s7  ;;  %s3655_s24 = smov (!%p51_p6, %s53_s24), %s2643_s27 }
  0xb9   : > { %p2954_p1 = por %p68_p9, %p3514_p8  ;;  %p3513_p3 = scmp.ne.s32.totalorder %s2623_s22, %s2619_s21 }
  0xba   : > { %p55_p10 = scmp.ge.s32.totalorder %s3655_s24, 2  ;;  %s83_s4 = ssub.s32 %s2639_s26, %s3653_s7 }
  0xbb   : > { %p3572_p11 = scmp.eq.s32.totalorder %s2815_s16, 0  ;;  %p84_p13 = scmp.eq.s32.totalorder %s83_s4, 0 }
  0xbc   : > { %s3657_s24 = smov (%p55_p10, %s3655_s24), 0  ;;  %s86_s3 = sadd.s32 1, %s2615_s20 }
  0xbd   : > { %p2967_p12 = por %p3572_p11, %p3513_p3  ;;  %3574 = sst [smem:[#allocation47_spill]] %s3657_s24 }
  0xbe   : > { %p93_p0 = scmp.ne.s32.totalorder %s2615_s20, %s2611_s19  ;;  %s57_s25 = ssub.s32 %s2643_s27, %s3657_s24 }
  0xbf   : > { %s3573_s30 = scalar_select %p2967_p12, 1, 0 }
  0xc0   : > { %p99_p2 = scmp.ne.s32.totalorder %s2611_s19, %s2607_s18  ;;  %p58_p4 = scmp.eq.s32.totalorder %s57_s25, 0 }
  0xc1   : > { %p2982_p6 = por %p93_p0, %p68_p9  ;;  %p3578_p10 = pmov %p3572_p11 }
  0xc2   : > { %s2987_s17 = scalar_select %p84_p13, %s2615_s20, %s86_s3  }
  0xc3   : > { %s2990_s9 = scalar_select %p58_p4, %s2627_s23, %s60_s2  }
  0xc4   : > { %3576 = sst [smem:[#allocation48_spill]] %s2987_s17  ;;  %p2994_p11 = por %p99_p2, %p3578_p10 }
  0xc5   : > { %3577 = sst [smem:[#allocation49_spill]] %s2990_s9  ;;  %p416_p3 = scmp.eq.s32.totalorder %s2815_s16, 3 }
  0xc6   : > { %s3579_s13 = scalar_select %p2994_p11, 1, 0 }
  0xc7   : > { %p422_p8 = scmp.eq.s32.totalorder %s1662_s11, 3  ;;  %p3523_p12 = scmp.lt.s32.totalorder %s2647_s28, 4 }
  0xc8   : > { %p3580_p5 = scmp.ne.s32.totalorder %s2627_s23, %s2623_s22  ;;  %s3008_s4 = sand.u32 1, %s2647_s28  }
  0xc9   : > { %p3582_p9 = scmp.ne.s32.totalorder %s2623_s22, %s2619_s21  ;;  %s547_s3 = sand.u32 1, %s2627_s23  }
  0xca   : > { %p3003_p7 = por %p416_p3, %p3580_p5  ;;  %s1675_s25 = sshll.u32 %s2643_s27, 7 }
  0xcb   : > { %p3013_p13 = por %p422_p8, %p3582_p9  ;;  %s1674_s5 = sshll.u32 %s547_s3, 3 }
  0xcc   : > { %s3581_s18 = scalar_select %p3003_p7, 1, 0 }
  0xcd   : > { %s3583_s2 = scalar_select %p3013_p13, 1, 0 }
  0xce   : > { %s3585_s0 = sld [smem:[#allocation51_spill]]  ;;  %p3028_p5 = pnand %p3523_p12, %p2954_p1 }
  0xcf   : > { %3584 = sst [smem:[#allocation50_spill]] %s3583_s2  ;;  %s549_s24 = scalar_lea.vmem [#allocation3], %s1674_s5 }
  0xd0   : > { %s556_s7 = sshll.u32 %s549_s24, 4  ;;  %s3526_s3 = scalar_lea.sflag [#allocation4], %s3008_s4  ;;  %s3032_s7 = int_to_ptr.vmem [resolvable:$true] %s556_s7 }
  0xd1   : > { %p2195_p3 = pneg %p3028_p5 }
  0xd4   : > { %s3022_s11 = scalar_lea.hbm %s3585_s0, %s1675_s25  ;;  %s2198_s25 = scalar_lea.hbm %s3585_s0, 256 }
  0xd5   : > { %s2193_s8 = scalar_lea.hbm %s3022_s11, 128  ;;  %p2199_p1 = scmp.lt.u32.totalorder %s3022_s11, %s3585_s0 }
  0xd6   : > { %p2194_p8 = scmp.ne.s32.totalorder %s3022_s11, %s2193_s8  ;;  %p2200_p4 = scmp.lt.u32.totalorder %s2198_s25, %s2193_s8 }
  0xd7   : > { %p2202_p9 = scmp.lt.u32.totalorder %s2193_s8, %s3022_s11 }
  0xd8   : > { %p2196_p0 = pnand %p2195_p3, %p2194_p8  ;;  %p2201_p10 = por %p2200_p4, %p2199_p1 }
  0xda   : > { %p2197_p2 = pneg %p2196_p0  ;;  %p2203_p12 = por %p2202_p9, %p2201_p10 }
  0xdc   : > { %p2204_p13 = pnand %p2203_p12, %p2197_p2 }
  0xde   : > { %2207 = shalt.err (!%p2204_p13)
}
  0xdf   : > { %s2208_s5 = scalar_lea.vmem %s3032_s7, 128  ;;  %s2654_s24 = smov [#allocation3]  }
  0xe0   : > { %p2209_p8 = scmp.ne.s32.totalorder %s3032_s7, %s2208_s5  ;;  %s2213_s10 = sshll.u32 %s2654_s24, 4  ;;  %s2214_s10 = int_to_ptr.vmem [resolvable:$false] %s2213_s10 }
  0xe1   : > { %s2215_s27 = scalar_lea.vmem %s2214_s10, 256  ;;  %p2216_p11 = scmp.lt.s32.totalorder %s3032_s7, %s2214_s10 }
  0xe2   : > { %p2211_p0 = pnand %p2209_p8, %p2195_p3  ;;  %p2217_p1 = scmp.lt.s32.totalorder %s2215_s27, %s2208_s5 }
  0xe4   : > { %p2212_p7 = pneg %p2211_p0  ;;  %p2218_p4 = por %p2217_p1, %p2216_p11 }
  0xe6   : > { %p2219_p10 = pnand %p2218_p4, %p2212_p7 }
  0xe8   : > { %2222 = shalt.err (!%p2219_p10)
}
  0xe9   : > { %1885 = dma.hbm_to_vmem [thread:$0]  (!%p3028_p5), %s3022_s11, 128, %s3032_s7, %s3526_s3  }
  0xea   : > { %p3587_p12 = scmp.lt.s32.totalorder %s2647_s28, 4  ;;  %s3071_s8 = sand.u32 1, %s2615_s20  }
  0xeb   : > { %s1676_s12 = sshll.u32 %s3071_s8, 4  ;;  %s1731_s14 = sshll.u32 %s2639_s26, 8 }
  0xec   : > { %p3066_p13 = pnand %p3587_p12, %p2982_p6  ;;  %s3589_s1 = sld [smem:[#allocation52_spill]] }
  0xed   : > { %s567_s7 = scalar_lea.vmem [#allocation6], %s1676_s12  ;;  %s3530_s11 = scalar_lea.sflag [#allocation7], %s3008_s4 }
  0xee   : > { %s3588_s9 = scalar_select %p3066_p13, 1, 0 }
  0xef   : > { %s574_s6 = sshll.u32 %s567_s7, 4  ;;  %p3087_p6 = pneg %p3066_p13  ;;  %s3080_s6 = int_to_ptr.vmem [resolvable:$true] %s574_s6 }
  0xf1   : > { %s3590_s27 = scalar_select %p3087_p6, 1, 0 }
  0xf2   : > { %s3078_s24 = scalar_lea.hbm %s3589_s1, %s1731_s14  ;;  %s2228_s5 = scalar_lea.hbm %s3589_s1, 512 }
  0xf3   : > { %s2223_s10 = scalar_lea.hbm %s3078_s24, 256  ;;  %p2229_p3 = scmp.lt.u32.totalorder %s3078_s24, %s3589_s1 }
  0xf4   : > { %p2224_p7 = scmp.ne.s32.totalorder %s3078_s24, %s2223_s10  ;;  %p2230_p2 = scmp.lt.u32.totalorder %s2228_s5, %s2223_s10 }
  0xf5   : > { %p2232_p8 = scmp.lt.u32.totalorder %s2223_s10, %s3078_s24 }
  0xf6   : > { %p2226_p11 = pnand %p3087_p6, %p2224_p7  ;;  %p2231_p9 = por %p2230_p2, %p2229_p3 }
  0xf8   : > { %p2227_p5 = pneg %p2226_p11  ;;  %p2233_p0 = por %p2232_p8, %p2231_p9 }
  0xfa   : > { %p2234_p1 = pnand %p2233_p0, %p2227_p5 }
  0xfc   : > { %2237 = shalt.err (!%p2234_p1)
}
  0xfd   : > { %s2238_s3 = scalar_lea.vmem %s3080_s6, 256  ;;  %s2655_s14 = smov [#allocation6]  }
  0xfe   : > { %p2239_p4 = scmp.ne.s32.totalorder %s3080_s6, %s2238_s3  ;;  %s2243_s25 = sshll.u32 %s2655_s14, 4  ;;  %s2244_s25 = int_to_ptr.vmem [resolvable:$false] %s2243_s25 }
  0xff   : > { %s2245_s12 = scalar_lea.vmem %s2244_s25, 512  ;;  %p2246_p7 = scmp.lt.s32.totalorder %s3080_s6, %s2244_s25 }
 0x100   : > { %p2241_p10 = pnand %p2239_p4, %p3087_p6  ;;  %p2247_p11 = scmp.lt.s32.totalorder %s2245_s12, %s2238_s3 }
 0x102   : > { %p2242_p12 = pneg %p2241_p10  ;;  %p2248_p3 = por %p2247_p11, %p2246_p7 }
 0x104   : > { %p2249_p2 = pnand %p2248_p3, %p2242_p12 }
 0x106   : > { %2252 = shalt.err (!%p2249_p2)
}
 0x107   : > { %s3538_s10 = smov 64   ;;  %s2657_s5 = smov 4  }
 0x108   : > { %1888 = dma.hbm_to_vmem [thread:$0]  (!%p3066_p13), %s3078_s24, 256, %s3080_s6, %s3530_s11, %s3538_s10, %s3538_s10, %s2657_s5  }
 0x109   : > { %s1680_s3 = sshll.u32 %s3071_s8, 2  ;;  %s1681_s7 = sshll.u32 %s2639_s26, 6 }
 0x10a   : > { %s3591_s12 = sld [smem:[#allocation54_spill]]  ;;  %s605_s1 = scalar_lea.vmem [#allocation9], %s1680_s3 }
 0x10b   : > { %s612_s23 = sshll.u32 %s605_s1, 4  ;;  %s2658_s17 = smov [#allocation17]   ;;  %s3122_s23 = int_to_ptr.vmem [resolvable:$true] %s612_s23 }
 0x10c   : > { %s3124_s20 = sshll.u32 %s2658_s17, 4  ;;  %s3533_s2 = scalar_lea.sflag [#allocation10], %s3008_s4  ;;  %s475_s20 = int_to_ptr.vmem [resolvable:$true] %s3124_s20 }
 0x110   : > { %s3120_s0 = scalar_lea.hbm %s3591_s12, %s1681_s7  ;;  %s2258_s14 = scalar_lea.hbm %s3591_s12, 128 }
 0x111   : > { %s2253_s24 = scalar_lea.hbm %s3120_s0, 64  ;;  %p2259_p0 = scmp.lt.u32.totalorder %s3120_s0, %s3591_s12 }
 0x112   : > { %p2254_p5 = scmp.ne.s32.totalorder %s3120_s0, %s2253_s24  ;;  %p2260_p1 = scmp.lt.u32.totalorder %s2258_s14, %s2253_s24 }
 0x113   : > { %p2262_p10 = scmp.lt.u32.totalorder %s2253_s24, %s3120_s0 }
 0x114   : > { %p2256_p9 = pnand %p2254_p5, %p3087_p6  ;;  %p2261_p4 = por %p2260_p1, %p2259_p0 }
 0x116   : > { %p2257_p8 = pneg %p2256_p9  ;;  %p2263_p12 = por %p2262_p10, %p2261_p4 }
 0x118   : > { %p2264_p7 = pnand %p2263_p12, %p2257_p8 }
 0x11a   : > { %2267 = shalt.err (!%p2264_p7)
}
 0x11b   : > { %s2268_s1 = scalar_lea.vmem %s3122_s23, 64  ;;  %s2659_s17 = smov [#allocation9]  }
 0x11c   : > { %p2269_p11 = scmp.ne.s32.totalorder %s3122_s23, %s2268_s1  ;;  %s2273_s3 = sshll.u32 %s2659_s17, 4  ;;  %s2274_s3 = int_to_ptr.vmem [resolvable:$false] %s2273_s3 }
 0x11d   : > { %s2275_s11 = scalar_lea.vmem %s2274_s3, 128  ;;  %p2276_p5 = scmp.lt.s32.totalorder %s3122_s23, %s2274_s3 }
 0x11e   : > { %p2271_p3 = pnand %p2269_p11, %p3087_p6  ;;  %p2277_p9 = scmp.lt.s32.totalorder %s2275_s11, %s2268_s1 }
 0x120   : > { %p2272_p2 = pneg %p2271_p3  ;;  %p2278_p0 = por %p2277_p9, %p2276_p5 }
 0x122   : > { %p2279_p1 = pnand %p2278_p0, %p2272_p2 }
 0x124   : > { %2282 = shalt.err (!%p2279_p1)
}
 0x125   : > { %1894 = dma.hbm_to_vmem [thread:$0]  (!%p3066_p13), %s3120_s0, 64, %s3122_s23, %s3533_s2  }
 0x126   : > { %s3592_s7 = sld [smem:[#allocation60_spill]]  ;;  %p3593_p4 = scmp.ne.s32.totalorder %s3565_s15, 0 }
 0x12c   : > { %s2283_s14 = scalar_lea.hbm %s3592_s7, 256 }
 0x12d   : > { %p2284_p8 = scmp.ne.s32.totalorder %s3592_s7, %s2283_s14  ;;  %p2290_p7 = scmp.lt.u32.totalorder %s2283_s14, %s3592_s7 }
 0x12f   : > { %p2286_p10 = pnand %p2284_p8, %p3593_p4 }
 0x131   : > { %p2287_p12 = pneg %p2286_p10 }
 0x133   : > { %p2292_p11 = pnand %p2290_p7, %p2287_p12 }
 0x135   : > { %2295 = shalt.err (!%p2292_p11)
}
 0x136   : > { %s2296_s11 = scalar_lea.vmem %s475_s20, 256  ;;  %p2304_p9 = scmp.lt.s32.totalorder %s475_s20, %s475_s20 }
 0x137   : > { %p2297_p3 = scmp.ne.s32.totalorder %s475_s20, %s2296_s11  ;;  %p2305_p0 = scmp.lt.s32.totalorder %s2296_s11, %s2296_s11 }
 0x139   : > { %p2299_p2 = pnand %p2297_p3, %p3593_p4  ;;  %p2306_p1 = por %p2305_p0, %p2304_p9 }
 0x13b   : > { %p2300_p5 = pneg %p2299_p2 }
 0x13d   : > { %p2307_p13 = pnand %p2306_p1, %p2300_p5 }
 0x13f   : > { %2310 = shalt.err (!%p2307_p13)
}
 0x140   : > { %p3594_p8 = scmp.ne.s32.totalorder %s3563_s29, 0  ;;  %s2660_s24 = smov [#allocation20]  }
 0x141   : > { %s498_s6 = sshll.u32 %s2660_s24, 4  ;;  %s2661_s14 = smov [#allocation23]   ;;  %s499_s6 = int_to_ptr.vmem [resolvable:$true] %s498_s6 }
 0x142   : > { %1866 = dma.hbm_to_vmem [thread:$0]  (!%p3594_p8), %s3592_s7, 256, %s475_s20, [#allocation13], %s3538_s10, %s3538_s10, %s2657_s5  }
 0x143   : > { %s523_s25 = sshll.u32 %s2661_s14, 4  ;;  %s3595_s3 = sld [smem:[#allocation62_spill]]  ;;  %s524_s25 = int_to_ptr.vmem [resolvable:$true] %s523_s25 }
 0x149   : > { %s2311_s11 = scalar_lea.hbm %s3595_s3, 512 }
 0x14a   : > { %p2312_p13 = scmp.ne.s32.totalorder %s3595_s3, %s2311_s11  ;;  %p2318_p7 = scmp.lt.u32.totalorder %s2311_s11, %s3595_s3 }
 0x14c   : > { %p2314_p10 = pnand %p2312_p13, %p3593_p4 }
 0x14e   : > { %p2315_p12 = pneg %p2314_p10 }
 0x150   : > { %p2320_p11 = pnand %p2318_p7, %p2315_p12 }
 0x152   : > { %2323 = shalt.err (!%p2320_p11)
}
 0x153   : > { %s2324_s20 = scalar_lea.vmem %s499_s6, 512  ;;  %p2332_p9 = scmp.lt.s32.totalorder %s499_s6, %s499_s6 }
 0x154   : > { %p2325_p3 = scmp.ne.s32.totalorder %s499_s6, %s2324_s20  ;;  %p2333_p0 = scmp.lt.s32.totalorder %s2324_s20, %s2324_s20 }
 0x156   : > { %p2327_p2 = pnand %p2325_p3, %p3593_p4  ;;  %p2334_p1 = por %p2333_p0, %p2332_p9 }
 0x158   : > { %p2328_p5 = pneg %p2327_p2 }
 0x15a   : > { %p2335_p6 = pnand %p2334_p1, %p2328_p5 }
 0x15c   : > { %2338 = shalt.err (!%p2335_p6)
}
 0x15d   : > { %1872 = dma.hbm_to_vmem [thread:$0]  (!%p3594_p8), %s3595_s3, 512, %s499_s6, [#allocation19], %s3538_s10, %s3538_s10, %s2657_s5  }
 0x15e   : > { %s3596_s24 = sld [smem:[#allocation64_spill]] }
 0x164   : > { %s3597_s14 = smov %s3596_s24  ;;  %s2339_s17 = scalar_lea.hbm %s3596_s24, 16 }
 0x165   : > { %p2340_p13 = scmp.ne.s32.totalorder %s3597_s14, %s2339_s17  ;;  %p2346_p12 = scmp.lt.u32.totalorder %s2339_s17, %s3597_s14 }
 0x167   : > { %p2342_p6 = pnand %p2340_p13, %p3593_p4 }
 0x169   : > { %p2343_p10 = pneg %p2342_p6 }
 0x16b   : > { %p2348_p7 = pnand %p2346_p12, %p2343_p10 }
 0x16d   : > { %2351 = shalt.err (!%p2348_p7)
}
 0x16e   : > { %s2352_s21 = scalar_lea.vmem %s524_s25, 16  ;;  %s2359_s6 = scalar_lea.vmem %s524_s25, 32 }
 0x16f   : > { %p2353_p11 = scmp.ne.s32.totalorder %s524_s25, %s2352_s21  ;;  %p2360_p5 = scmp.lt.s32.totalorder %s524_s25, %s524_s25 }
 0x170   : > { %p2361_p9 = scmp.lt.s32.totalorder %s2359_s6, %s2352_s21 }
 0x171   : > { %p2355_p3 = pnand %p2353_p11, %p3593_p4 }
 0x172   : > { %p2362_p0 = por %p2361_p9, %p2360_p5 }
 0x173   : > { %p2356_p2 = pneg %p2355_p3 }
 0x175   : > { %p2363_p1 = pnand %p2362_p0, %p2356_p2 }
 0x177   : > { %2366 = shalt.err (!%p2363_p1)
}
 0x178   : > { %1878 = dma.hbm_to_vmem [thread:$0]  (!%p3594_p8), %s3597_s14, 16, %s524_s25, [#allocation22]  }
 0x179   : > { %s2662_s23 = smov [#allocation24]   ;;  %s1679_s17 = sshll.u32 %s2639_s26, 4 }
 0x17a   : > { %s534_s24 = sshll.u32 %s2662_s23, 4  ;;  %s3598_s0 = sld [smem:[#allocation65_spill]]  ;;  %s535_s24 = int_to_ptr.vmem [resolvable:$true] %s534_s24 }
 0x180   : > { %s2367_s20 = scalar_lea.hbm %s3598_s0, 16 }
 0x181   : > { %p2368_p13 = scmp.ne.s32.totalorder %s3598_s0, %s2367_s20  ;;  %p2374_p12 = scmp.lt.u32.totalorder %s2367_s20, %s3598_s0 }
 0x183   : > { %p2370_p6 = pnand %p2368_p13, %p3593_p4 }
 0x185   : > { %p2371_p10 = pneg %p2370_p6 }
 0x187   : > { %p2376_p7 = pnand %p2374_p12, %p2371_p10 }
 0x189   : > { %2379 = shalt.err (!%p2376_p7)
}
 0x18a   : > { %s2380_s25 = scalar_lea.vmem %s535_s24, 16  ;;  %s2387_s12 = scalar_lea.vmem %s535_s24, 32 }
 0x18b   : > { %p2381_p11 = scmp.ne.s32.totalorder %s535_s24, %s2380_s25  ;;  %p2388_p5 = scmp.lt.s32.totalorder %s535_s24, %s535_s24 }
 0x18c   : > { %p2389_p9 = scmp.lt.s32.totalorder %s2387_s12, %s2380_s25 }
 0x18d   : > { %p2383_p3 = pnand %p2381_p11, %p3593_p4 }
 0x18e   : > { %p2390_p0 = por %p2389_p9, %p2388_p5 }
 0x18f   : > { %p2384_p2 = pneg %p2383_p3 }
 0x191   : > { %p2391_p1 = pnand %p2390_p0, %p2384_p2 }
 0x193   : > { %2394 = shalt.err (!%p2391_p1)
}
 0x194   : > { %1881 = dma.hbm_to_vmem [thread:$0]  (!%p3594_p8), %s3598_s0, 16, %s535_s24, [#allocation25]  }
 0x195   : > { %s3599_s11 = sld [smem:[#allocation53_spill]]  ;;  %s587_s21 = scalar_lea.vmem [#allocation8], %s3071_s8 }
 0x196   : > { %s594_s6 = sshll.u32 %s587_s21, 4  ;;  %p3600_p13 = scmp.ne.s32.totalorder %s3590_s27, 0  ;;  %s595_s6 = int_to_ptr.vmem [resolvable:$true] %s594_s6 }
 0x19b   : > { %s3235_s20 = scalar_lea.hbm %s3599_s11, %s1679_s17  ;;  %s2400_s25 = scalar_lea.hbm %s3599_s11, 32 }
 0x19c   : > { %s2395_s29 = scalar_lea.hbm %s3235_s20, 16  ;;  %p2401_p8 = scmp.lt.u32.totalorder %s3235_s20, %s3599_s11 }
 0x19d   : > { %p2396_p4 = scmp.ne.s32.totalorder %s3235_s20, %s2395_s29  ;;  %p2402_p12 = scmp.lt.u32.totalorder %s2400_s25, %s2395_s29 }
 0x19e   : > { %p2404_p11 = scmp.lt.u32.totalorder %s2395_s29, %s3235_s20 }
 0x19f   : > { %p2398_p6 = pnand %p2396_p4, %p3600_p13  ;;  %p2403_p7 = por %p2402_p12, %p2401_p8 }
 0x1a1   : > { %p2399_p10 = pneg %p2398_p6  ;;  %p2405_p3 = por %p2404_p11, %p2403_p7 }
 0x1a3   : > { %p2406_p2 = pnand %p2405_p3, %p2399_p10 }
 0x1a5   : > { %2409 = shalt.err (!%p2406_p2)
}
 0x1a6   : > { %s2410_s1 = scalar_lea.vmem %s595_s6, 16  ;;  %s2663_s10 = smov [#allocation8]  }
 0x1a7   : > { %p2411_p5 = scmp.ne.s32.totalorder %s595_s6, %s2410_s1  ;;  %s2415_s15 = sshll.u32 %s2663_s10, 4  ;;  %s2416_s15 = int_to_ptr.vmem [resolvable:$false] %s2415_s15 }
 0x1a8   : > { %s2417_s21 = scalar_lea.vmem %s2416_s15, 32  ;;  %p2418_p1 = scmp.lt.s32.totalorder %s595_s6, %s2416_s15 }
 0x1a9   : > { %p2413_p9 = pnand %p2411_p5, %p3600_p13  ;;  %p2419_p4 = scmp.lt.s32.totalorder %s2417_s21, %s2410_s1 }
 0x1ab   : > { %p2414_p0 = pneg %p2413_p9  ;;  %p2420_p6 = por %p2419_p4, %p2418_p1 }
 0x1ad   : > { %p2421_p8 = pnand %p2420_p6, %p2414_p0 }
 0x1af   : > { %2424 = shalt.err (!%p2421_p8)
}
 0x1b0   : > { %p3601_p12 = scmp.ne.s32.totalorder %s3588_s9, 0  ;;  %s3602_s29 = scalar_lea.sflag [#allocation7], %s3008_s4 }
 0x1b1   : > { %s3603_s25 = sld [smem:[#allocation55_spill]]  ;;  %s622_s1 = scalar_lea.vmem [#allocation11], %s3071_s8 }
 0x1b2   : > { %1891 = dma.hbm_to_vmem [thread:$0]  (!%p3601_p12), %s3235_s20, 16, %s595_s6, %s3602_s29  }
 0x1b3   : > { %s629_s10 = sshll.u32 %s622_s1, 4  ;;  %s1683_s15 = sshll.u32 %s3071_s8, 3  ;;  %s630_s10 = int_to_ptr.vmem [resolvable:$true] %s629_s10 }
 0x1b7   : > { %s3604_s12 = smov %s3603_s25  ;;  %s3262_s23 = scalar_lea.hbm %s3603_s25, %s1679_s17 }
 0x1b8   : > { %s2425_s21 = scalar_lea.hbm %s3262_s23, 16  ;;  %s2430_s29 = scalar_lea.hbm %s3604_s12, 32 }
 0x1b9   : > { %p2426_p10 = scmp.ne.s32.totalorder %s3262_s23, %s2425_s21  ;;  %p2431_p3 = scmp.lt.u32.totalorder %s3262_s23, %s3604_s12 }
 0x1ba   : > { %p2432_p2 = scmp.lt.u32.totalorder %s2430_s29, %s2425_s21  ;;  %p2434_p9 = scmp.lt.u32.totalorder %s2425_s21, %s3262_s23 }
 0x1bb   : > { %p2428_p7 = pnand %p2426_p10, %p3600_p13 }
 0x1bc   : > { %p2433_p5 = por %p2432_p2, %p2431_p3 }
 0x1bd   : > { %p2429_p11 = pneg %p2428_p7 }
 0x1be   : > { %p2435_p0 = por %p2434_p9, %p2433_p5 }
 0x1c0   : > { %p2436_p1 = pnand %p2435_p0, %p2429_p11 }
 0x1c2   : > { %2439 = shalt.err (!%p2436_p1)
}
 0x1c3   : > { %s2440_s24 = scalar_lea.vmem %s630_s10, 16  ;;  %s2664_s25 = smov [#allocation11]  }
 0x1c4   : > { %p2441_p4 = scmp.ne.s32.totalorder %s630_s10, %s2440_s24  ;;  %s2445_s1 = sshll.u32 %s2664_s25, 4  ;;  %s2446_s1 = int_to_ptr.vmem [resolvable:$false] %s2445_s1 }
 0x1c5   : > { %s2447_s20 = scalar_lea.vmem %s2446_s1, 32  ;;  %p2448_p10 = scmp.lt.s32.totalorder %s630_s10, %s2446_s1 }
 0x1c6   : > { %p2443_p6 = pnand %p2441_p4, %p3600_p13  ;;  %p2449_p7 = scmp.lt.s32.totalorder %s2447_s20, %s2440_s24 }
 0x1c8   : > { %p2444_p8 = pneg %p2443_p6  ;;  %p2450_p12 = por %p2449_p7, %p2448_p10 }
 0x1ca   : > { %p2451_p2 = pnand %p2450_p12, %p2444_p8 }
 0x1cc   : > { %2454 = shalt.err (!%p2451_p2)
}
 0x1cd   : > { %p3605_p3 = scmp.ne.s32.totalorder %s3588_s9, 0  ;;  %s3606_s21 = scalar_lea.sflag [#allocation10], %s3008_s4 }
 0x1ce   : > { %s1732_s6 = sshll.u32 %s2639_s26, 7  ;;  %s3607_s17 = sld [smem:[#allocation57_spill]] }
 0x1cf   : > { %1897 = dma.hbm_to_vmem [thread:$0]  (!%p3605_p3), %s3262_s23, 16, %s630_s10, %s3606_s21  }
 0x1d0   : > { %s640_s24 = scalar_lea.vmem [#allocation14], %s1683_s15 }
 0x1d1   : > { %s647_s1 = sshll.u32 %s640_s24, 4  ;;  %s3293_s1 = int_to_ptr.vmem [resolvable:$true] %s647_s1 }
 0x1d4   : > { %s3289_s25 = scalar_lea.hbm %s3607_s17, %s1732_s6  ;;  %s2460_s21 = scalar_lea.hbm %s3607_s17, 256 }
 0x1d5   : > { %s2455_s20 = scalar_lea.hbm %s3289_s25, 128  ;;  %p2461_p9 = scmp.lt.u32.totalorder %s3289_s25, %s3607_s17 }
 0x1d6   : > { %p2456_p12 = scmp.ne.s32.totalorder %s3289_s25, %s2455_s20  ;;  %p2462_p0 = scmp.lt.u32.totalorder %s2460_s21, %s2455_s20 }
 0x1d7   : > { %p2464_p4 = scmp.lt.u32.totalorder %s2455_s20, %s3289_s25 }
 0x1d8   : > { %p2458_p11 = pnand %p2456_p12, %p3600_p13  ;;  %p2463_p1 = por %p2462_p0, %p2461_p9 }
 0x1da   : > { %p2459_p5 = pneg %p2458_p11  ;;  %p2465_p6 = por %p2464_p4, %p2463_p1 }
 0x1dc   : > { %p2466_p8 = pnand %p2465_p6, %p2459_p5 }
 0x1de   : > { %2469 = shalt.err (!%p2466_p8)
}
 0x1df   : > { %s2470_s8 = scalar_lea.vmem %s3293_s1, 128  ;;  %s2665_s15 = smov [#allocation14]  }
 0x1e0   : > { %p2471_p10 = scmp.ne.s32.totalorder %s3293_s1, %s2470_s8  ;;  %s2475_s2 = sshll.u32 %s2665_s15, 4  ;;  %s2476_s2 = int_to_ptr.vmem [resolvable:$false] %s2475_s2 }
 0x1e1   : > { %s2477_s24 = scalar_lea.vmem %s2476_s2, 256  ;;  %p2478_p12 = scmp.lt.s32.totalorder %s3293_s1, %s2476_s2 }
 0x1e2   : > { %p2473_p7 = pnand %p2471_p10, %p3600_p13  ;;  %p2479_p11 = scmp.lt.s32.totalorder %s2477_s24, %s2470_s8 }
 0x1e4   : > { %p2474_p2 = pneg %p2473_p7  ;;  %p2480_p9 = por %p2479_p11, %p2478_p12 }
 0x1e6   : > { %p2481_p0 = pnand %p2480_p9, %p2474_p2 }
 0x1e8   : > { %2484 = shalt.err (!%p2481_p0)
}
 0x1e9   : > { %s3608_s20 = smov 64   ;;  %s3609_s23 = scalar_lea.sflag [#allocation4], %s3008_s4 }
 0x1ea   : > { %1900 = dma.hbm_to_vmem [thread:$0]  (!%p3605_p3), %s3289_s25, 128, %s3293_s1, %s3609_s23, %s3608_s20, %s3608_s20, %s2657_s5  }
 0x1eb   : > { %s3610_s27 = sld [smem:[#allocation45_spill]] }
 0x1f1   : > { %p3611_p13 = scmp.ne.s32.totalorder %s3610_s27, 0 }
 0x1f2   : > { %s661_s10 = sand.u32 (!%p3611_p13), 1, %s2815_s16   ;;  %s663_s21 = sand.u32 (!%p3611_p13), 1, %s2623_s22  }
 0x1f3   : > { %659 = sbr.rel (%p3611_p13) target bundleno = 3033 (0xbd9), region = 80  ;;  %s3327_s6 = sshll.u32 (!%p3611_p13), %s663_s21, 3 }
 0x1f4   : > { %s662_s9 = scalar_lea.sflag (!%p3611_p13), [#allocation4], %s661_s10  ;;  %s665_s29 = scalar_lea.vmem (!%p3611_p13), [#allocation3], %s3327_s6 }
 0x1f5   : > { %p3612_p5 = scmp.ne.s32.totalorder (!%p3611_p13), %s3573_s30, 0 }
 0x1fa   : > { %2558 = dma.done.wait (%p3612_p5), %s662_s9, 128  }
 0x1fb   : > { %2560 = vsyncadd (%p3612_p5), %s662_s9, 4294967168  ;;  %s3335_s4 = sand.u32 1, %s2611_s19   ;;  %s671_s25 = scalar_lea.sflag [#allocation7], %s661_s10 }
 0x1fc   : > { %s1688_s5 = sshll.u32 %s3335_s4, 4  ;;  %p3613_p3 = scmp.ne.s32.totalorder %s3579_s13, 0 }
 0x1fd   : > { %s3338_s1 = scalar_lea.vmem [#allocation6], %s1688_s5 }
 0x1fe   : > { %2562 = dma.done.wait (%p3613_p3), %s671_s25, 272  }
 0x1ff   : > { %2564 = vsyncadd (%p3613_p3), %s671_s25, 4294967024  ;;  %s1689_s8 = sshll.u32 %s3335_s4, 2  ;;  %s682_s30 = scalar_lea.vmem [#allocation8], %s3335_s4 }
 0x200   : > { %s688_s15 = scalar_lea.sflag [#allocation10], %s661_s10  ;;  %s3346_s2 = scalar_lea.vmem [#allocation9], %s1689_s8 }
 0x201   : > { %2566 = dma.done.wait (%p3613_p3), %s688_s15, 80  }
 0x202   : > { %2568 = vsyncadd (%p3613_p3), %s688_s15, 4294967216  ;;  %s699_s24 = scalar_lea.vmem [#allocation11], %s3335_s4  ;;  %p3614_p1 = scmp.eq.s32.totalorder %s2815_s16, 0 }
 0x204   : > { %2570 = dma.done.wait (%p3614_p1), [#allocation13], 128   ;;  %p3615_p4 = pmov %p3614_p1 }
 0x205   : > { %s1691_s20 = sshll.u32 %s3335_s4, 3 }
 0x206   : > { %2572 = vsyncadd (%p3615_p4), [#allocation13], 4294967168  ;;  %s3358_s23 = scalar_lea.vmem [#allocation14], %s1691_s20 }
 0x207   : > { %2574 = dma.done.wait (%p3613_p3), %s662_s9, 128  }
 0x208   : > { %2576 = vsyncadd (%p3613_p3), %s662_s9, 4294967168  ;;  %p3616_p6 = pmov %p3614_p1 }
 0x209   : > { %p3617_p8 = pmov %p3614_p1 }
 0x20a   : > { %2578 = dma.done.wait (%p3616_p6), [#allocation7], 16  }
 0x20b   : > { %2580 = vsyncadd (%p3617_p8), [#allocation7], 4294967280  ;;  %p3618_p10 = pmov %p3614_p1 }
 0x20c   : > { %p3619_p7 = pmov %p3614_p1 }
 0x20d   : > { %2582 = dma.done.wait (%p3618_p10), [#allocation10], 16  }
 0x20e   : > { %2584 = vsyncadd (%p3619_p7), [#allocation10], 4294967280  ;;  %p3620_p2 = pmov %p3614_p1 }
 0x20f   : > { %p3621_p12 = pmov %p3614_p1 }
 0x210   : > { %2586 = dma.done.wait (%p3620_p2), [#allocation13], 256  }
 0x211   : > { %2588 = vsyncadd (%p3621_p12), [#allocation13], 4294967040  ;;  %p3622_p11 = pmov %p3614_p1 }
 0x212   : > { %p3623_p9 = pmov %p3614_p1 }
 0x213   : > { %2590 = dma.done.wait (%p3622_p11), [#allocation19], 528  }
 0x214   : > { %2592 = vsyncadd (%p3623_p9), [#allocation19], 4294966768  ;;  %p3624_p0 = pmov %p3614_p1 }
 0x216   : > { %2594 = dma.done.wait (%p3624_p0), [#allocation22], 32   ;;  %p3625_p13 = pmov %p3624_p0 }
 0x217   : > { %p3626_p5 = pmov %p3624_p0 }
 0x218   : > { %2596 = vsyncadd (%p3625_p13), [#allocation22], 4294967264 }
 0x219   : > { %2598 = dma.done.wait (%p3626_p5), [#allocation25], 16   ;;  %p3627_p3 = pmov %p3624_p0 }
 0x21a   : > { %v815_v0 = vld [vmem:[%s665_s29] sm:$0xff]  ;;  %s813_s13 = scalar_lea.vmem [#allocation26], %s3327_s6  ;;  %s3628_s27 = sld [smem:[#allocation42_spill]] }
 0x21b   : > { %2600 = vsyncadd (%p3627_p3), [#allocation25], 4294967280 }
 0x220   : > { %p1701_p1 = scmp.ne.s32.totalorder %s3628_s27, 0 }
 0x221   : > { %vm820_vm0 = vcmask (!%p1701_p1), 261120  }
 0x222   : > { %819 = sbr.rel (%p1701_p1) target bundleno = 553 (0x229), region = 144  ;;  %821 = vst.msk [vmem:[#allocation2] sm:$0xff] (!%p1701_p1), %vm820_vm0, %v815_v0 }
 0x229 PF: > { %v2036_v1 = vld [vmem:[%s3338_s1] sm:$0xff]   ;;  %v2666_v2 = vmov 0.0   ;;  %v2037_v3 = vld [vmem:[%s3338_s1 + $0x8] sm:$0xff]   ;;  %vm2667_vm1 = vmmov 0   ;;  %vm901_vm2 = vcmask 130048   ;;  %v822_v6 = vpack.c.bf16 %v815_v0, %v815_v0  ;;  %s2668_s16 = smov 112  }
 0x22a   : > { %1752 = vmatprep.subr.bf16.mxu0 %v2666_v2  ;;  %1760 = vmatprep.subr.bf16.mxu1 %v2666_v2  ;;  %v893_v4 = vld [vmem:[%s3346_s2] sm:$0xf]  ;;  %vm839_vm3 = vcmask 261120   ;;  %s2669_s10 = smov 7   ;;  %s2670_s9 = smov 127   ;;  %v948_v23 = vlaneseq  ;;  %vm958_vm4 = vcmask 56320  }
 0x22b   : > { %1753 = vmatpush3.bf16.msra.mxu0 %v2036_v1  ;;  %1756 = vmatprep.mubr.msk.bf16.mxu0 %vm2667_vm1, %v2666_v2  ;;  %v906_v5 = vsel %vm901_vm2, %v893_v4, 0  ;;  %v1705_v12 = vld [vmem:[%s682_s30] ss:$0 sm:$0xff]  ;;  %s2671_s29 = smov 6   ;;  %s2672_s4 = smov 126   ;;  %vm972_vm6 = vcmask 48128  }
 0x22c   : > { %1754 = vmatprep.subr.bf16.mxu0 %v2666_v2  ;;  %1762 = vmatprep.mubr.msk.bf16.mxu1 %vm2667_vm1, %v2666_v2  ;;  %v1706_v17 = vld [vmem:[%s699_s24] ss:$0 sm:$0xff]  ;;  %v949_v24 = vshrl.u32 %v948_v23, 7  ;;  %s2673_s5 = smov 4   ;;  %s2674_s25 = smov 124   ;;  %vm987_vm8 = vcmask 31744  }
 0x22d   : > { %1761 = vmatpush3.bf16.xpose.msra.mxu1 %v906_v5  ;;  %s2675_s1 = smov 96   ;;  %vm1062_vm10 = vcmask 1043456   ;;  %v1044_v47 = vld [vmem:[#allocation12] sm:$0xff]  ;;  %vm1046_vm11 = vcmask 64512   ;;  %v2038_v59 = vld [vmem:[%s3358_s23] sm:$0xff]   ;;  %s3629_s8 = sld [smem:[#allocation42_spill]] }
 0x22e   : > { %1772 = vmatprep.subr.bf16.mxu1 %v2666_v2  ;;  %v950_v25 = vsub.s32 7, %v949_v24  ;;  %v1108_v4 = vld [vmem:[#allocation2] sm:$0xff] }
 0x22f   : > { %1755 = vmatpush3.bf16.msra.mxu0 %v2037_v3 }
 0x230   : > { %1766 = vmatprep.subr.bf16.mxu0 %v2666_v2  ;;  %v960_v26 = vand.u32 1, %v950_v25  ;;  %v974_v35 = vshra.s32 %v950_v25, 1  ;;  %v989_v41 = vshra.s32 %v950_v25, 2 }
 0x232   : > { %1757 = vmatmul.mubr.msk.bf16.vlgmr.msra.gmra.mrb[0].mxu0 %vm839_vm3, %v822_v6  ;;  %vm961_vm5 = vcmp.eq.s32.totalorder %v960_v26, 1  ;;  %v975_v36 = vand.u32 1, %v974_v35  ;;  %v990_v42 = vand.u32 1, %v989_v41 }
 0x233   : > { %1768 = vmatprep.mubr.msk.bf16.mxu0 %vm2667_vm1, %v2666_v2  ;;  %p1712_p4 = scmp.ne.s32.totalorder %s3629_s8, 1 }
 0x234   : > { %vm976_vm7 = vcmp.eq.s32.totalorder %v975_v36, 1  ;;  %vm991_vm9 = vcmp.eq.s32.totalorder %v990_v42, 1  ;;  %vm2677_vm12 = vmmov (!%p1712_p4), 0   ;;  %v1713_v26 = vld [vmem:[#allocation15] ss:$0 sm:$0xff] (!%p1712_p4)  ;;  %vm1306_vm13 = vcmask (!%p1712_p4), 523264  }
 0x235   : > { %v1719_v42 = vld [vmem:[#allocation21] ss:$0 sm:$0xff] (!%p1712_p4) }
 0x305   : > { %v877_v7 = vpop.f32.mrb[0].mxu0 }
 0x306   : > { %v892_v8 = vpack.c.bf16 %v877_v7, %v877_v7  ;;  %v1758_v9 = vpop.f32.mrb[1].mxu0  ;;  %v890_v15 = vadd.f32 %v1705_v12, %v877_v7 }
 0x307   : > { %v880_v10 = vpop.f32.mrb[2].mxu0 }
 0x308   : > { %996 = vrot.lane.b32.xlu0 %v892_v8, %s2668_s16  ;;  %v1759_v11 = vpop.f32.mrb[3].mxu0  ;;  %1763 = vmatmul.mubr.msk.bf16.vlgmr.msra.gmra.mrb[0].mxu1 %vm901_vm2, %v892_v8  ;;  %v891_v16 = vpack.c.bf16 %v890_v15, %v890_v15 }
 0x309   : > { %1774 = vmatprep.mubr.msk.bf16.mxu1 %vm2667_vm1, %v2666_v2 }
 0x37a   : > { %v997_v13 = vpop.permute.xlu0 %996 }
 0x37b   : > { %v1002_v14 = vsel %vm901_vm2, %v997_v13, 0 }
 0x37c   : > { %1767 = vmatpush3.bf16.xpose.msra.mxu0 %v1002_v14 }
 0x37d   : > { %1778 = vmatprep.subr.bf16.mxu0 %v2666_v2 }
 0x383   : > { %1769 = vmatmul.mubr.msk.bf16.vlgmr.msra.gmra.mrb[4].mxu0 %vm901_vm2, %v891_v16 }
 0x384   : > { %1780 = vmatprep.mubr.msk.bf16.mxu0 %vm2667_vm1, %v2666_v2  ;;  %1779 = vmatpush3.bf16.msra.mxu0 %v2038_v59  ;;  %v1725_v59 = vld [vmem:[#allocation23] ss:$0 sm:$0xff] (!%p1712_p4) }
 0x3db   : > { %v942_v18 = vpop.f32.mrb[0].mxu1 }
 0x3dc   : > { %v943_v19 = vadd.f32 %v1706_v17, %v942_v18  ;;  %v1764_v20 = vpop.f32.mrb[1].mxu1  ;;  %v2043_v17 = vld [vmem:[#allocation17] sm:$0xff] (!%p1712_p4)   ;;  %v2676_v18 = vmov (!%p1712_p4), 0.0  }
 0x3dd   : > { %v945_v21 = vpop.f32.mrb[2].mxu1  ;;  %1784 = vmatprep.subr.bf16.mxu0 (!%p1712_p4), %v2676_v18  ;;  %v2045_v20 = vld [vmem:[#allocation20] sm:$0xff] (!%p1712_p4)  }
 0x3de   : > { %955 = vrot.lane.b32.xlu1 %v943_v19, %s2669_s10  ;;  %952 = vrot.lane.b32.xlu0 %v943_v19, %s2670_s9  ;;  %v1765_v22 = vpop.f32.mrb[3].mxu1  ;;  %v2046_v21 = vld [vmem:[#allocation20 + $0x8] sm:$0xff] (!%p1712_p4)  }
 0x450   : > { %v956_v27 = vpop.permute.xlu1 %955  ;;  %v953_v28 = vpop.permute.xlu0 %952 }
 0x451   : > { %v959_v29 = vsel %vm958_vm4, %v953_v28, %v956_v27  ;;  %v1714_v28 = vld [vmem:[#allocation16] ss:$0 sm:$0xff] (!%p1712_p4) }
 0x452   : > { %v964_v30 = vsel %vm961_vm5, %v959_v29, %v943_v19  ;;  %v2044_v19 = vld [vmem:[#allocation17 + $0x8] sm:$0xff] (!%p1712_p4)  }
 0x453   : > { %969 = vrot.lane.b32.xlu0 %v964_v30, %s2671_s29  ;;  %966 = vrot.lane.b32.xlu1 %v964_v30, %s2672_s4 }
 0x456   : > { %v1038_v31 = vpop.f32.mrb[4].mxu0 }
 0x457   : > { %v1770_v32 = vpop.f32.mrb[5].mxu0 }
 0x458   : > { %v1041_v33 = vpop.f32.mrb[6].mxu0  ;;  %v2047_v32 = vld [vmem:[#allocation20 + $0x10] sm:$0xff] (!%p1712_p4)  }
 0x459   : > { %v1771_v34 = vpop.f32.mrb[7].mxu0  ;;  %v2048_v33 = vld [vmem:[#allocation20 + $0x18] sm:$0xff] (!%p1712_p4)  }
 0x45a   : > { %v1715_v34 = vld [vmem:[#allocation18] ss:$0 sm:$0xff] (!%p1712_p4) }
 0x4c5   : > { %v970_v37 = vpop.permute.xlu0 %969  ;;  %v967_v38 = vpop.permute.xlu1 %966 }
 0x4c6   : > { %v973_v39 = vsel %vm972_vm6, %v967_v38, %v970_v37 }
 0x4c7   : > { %v979_v40 = vsel %vm976_vm7, %v973_v39, %v964_v30 }
 0x4c8   : > { %984 = vrot.lane.b32.xlu0 %v979_v40, %s2673_s5  ;;  %981 = vrot.lane.b32.xlu1 %v979_v40, %s2674_s25 }
 0x4cc   : > { %1057 = vrot.lane.b32.xlu0 %v892_v8, %s2675_s1 }
 0x53a   : > { %v985_v43 = vpop.permute.xlu0 %984  ;;  %v982_v44 = vpop.permute.xlu1 %981 }
 0x53b   : > { %v988_v45 = vsel %vm987_vm8, %v982_v44, %v985_v43 }
 0x53c   : > { %v994_v46 = vsel %vm991_vm9, %v988_v45, %v979_v40 }
 0x53d   : > { %v1039_v48 = vadd.f32 %v1038_v31, %v994_v46 }
 0x53e   : > { %v1058_v49 = vpop.permute.xlu0 %1057 }
 0x53f   : > { %v1064_v50 = vsel %vm1062_vm10, %v1058_v49, 0  ;;  %v1045_v51 = vadd.f32 %v1044_v47, %v1039_v48 }
 0x540   : > { %1773 = vmatpush3.bf16.msra.mxu1 %v1064_v50 }
 0x541   : > { %v1047_v52 = vsel %vm1046_vm11, %v1045_v51, -inf  ;;  %1792 = vmatprep.subr.bf16.mxu1 (!%p1712_p4), %v2676_v18 }
 0x542   : > { %1048 = vmax.xlane.f32.xlu1 %v1047_v52 }
 0x5cf   : > { %v1049_v53 = vpop.xlane.xlu1 %1048 }
 0x5d0   : > { %v1050_v54 = vsub.f32 %v1045_v51, %v1049_v53 }
 0x5d2   : > { %v1051_v55 = vmul.f32 1.442695, %v1050_v54 }
 0x5d4   : > { %2039 = vpow2.f32 %v1051_v55 }
 0x5de   : > { %v2040_v56 = vpop.eup %2039 }
 0x5df   : > { %v1053_v57 = vsel %vm1046_vm11, %v2040_v56, 0.0  ;;  %v1056_v58 = vpack.c.bf16 %v2040_v56, %v2040_v56 }
 0x5e0   : > { %1054 = vadd.xlane.f32.xlu0 %v1053_v57 }
 0x5e1   : > { %1775 = vmatmul.mubr.msk.bf16.vlgmr.msra.gmra.mrb[4].mxu1 %vm1046_vm11, %v1056_v58 }
 0x5e2   : > { %1800 = vmatprep.mubr.msk.bf16.mxu1 (!%p1712_p4), %vm2677_vm12, %v2676_v18  ;;  %1793 = vmatpush3.bf16.msra.mxu1 (!%p1712_p4), %v2045_v20 }
 0x5e3   : > { %1794 = vmatprep.subr.bf16.mxu1 (!%p1712_p4), %v2676_v18 }
 0x5e6   : > { %1795 = vmatpush3.bf16.msra.mxu1 (!%p1712_p4), %v2046_v21 }
 0x5e7   : > { %1796 = vmatprep.subr.bf16.mxu1 (!%p1712_p4), %v2676_v18 }
 0x5ea   : > { %1797 = vmatpush3.bf16.msra.mxu1 (!%p1712_p4), %v2047_v32 }
 0x5eb   : > { %1798 = vmatprep.subr.bf16.mxu1 (!%p1712_p4), %v2676_v18 }
 0x5ee   : > { %1799 = vmatpush3.bf16.msra.mxu1 (!%p1712_p4), %v2048_v33 }
 0x66d   : > { %v1055_v60 = vpop.xlane.xlu0 %1054 }
 0x66e   : > { %2041 = vrcp.f32 %v1055_v60 }
 0x678   : > { %v2042_v61 = vpop.eup %2041 }
 0x6b4   : > { %v1100_v62 = vpop.f32.mrb[4].mxu1 }
 0x6b5   : > { %v1107_v63 = vmul.f32 %v2042_v61, %v1100_v62  ;;  %v1776_v0 = vpop.f32.mrb[5].mxu1  ;;  %v1726_v61 = vld [vmem:[#allocation24] ss:$0 sm:$0xff] (!%p1712_p4) }
 0x6b6   : > { %v1103_v1 = vpop.f32.mrb[6].mxu1 }
 0x6b7   : > { %v1109_v2 = vpack.c.bf16 %v1107_v63, %v1107_v63  ;;  %v1777_v3 = vpop.f32.mrb[7].mxu1 }
 0x6b9   : > { %1781 = vmatmul.mubr.msk.bf16.vlgmr.msra.gmra.mrb[8].mxu0 %vm901_vm2, %v1109_v2 }
 0x6ba   : > { %1788 = vmatprep.mubr.msk.bf16.mxu0 (!%p1712_p4), %vm2677_vm12, %v2676_v18  ;;  %1785 = vmatpush3.bf16.msra.mxu0 (!%p1712_p4), %v2043_v17 }
 0x6bb   : > { %1786 = vmatprep.subr.bf16.mxu0 (!%p1712_p4), %v2676_v18 }
 0x6be   : > { %1787 = vmatpush3.bf16.msra.mxu0 (!%p1712_p4), %v2044_v19 }
 0x789   : > { %1166 = sbr.rel (%p1712_p4) target bundleno = 3006 (0xbbe), region = 148 }
 0x78c   : > { %v1155_v5 = vpop.f32.mrb[8].mxu0 }
 0x78d   : > { %v1161_v6 = vadd.f32 %v1155_v5, %v1108_v4  ;;  %v1782_v7 = vpop.f32.mrb[9].mxu0 }
 0x78e   : > { %v1158_v8 = vpop.f32.mrb[10].mxu0 }
 0x78f   : > { %1162 = vst.msk [vmem:[#allocation2] sm:$0xff] %vm839_vm3, %v1161_v6  ;;  %v1783_v9 = vpop.f32.mrb[11].mxu0 }
 0x796   : > { %v1167_v10 = vld [vmem:[#allocation2] sm:$0xff] }
 0x797   : > { %v1170_v11 = vsel %vm839_vm3, %v1167_v10, 0.0 }
 0x798   : > { %1171 = vadd.xlane.f32.xlu0 %v1170_v11 }
 0x825   : > { %v1172_v12 = vpop.xlane.xlu0 %1171 }
 0x826   : > { %v1174_v13 = vmul.f32 0.03125, %v1172_v12 }
 0x828   : > { %v1175_v14 = vsub.f32 %v1167_v10, %v1174_v13 }
 0x82a   : > { %v1176_v15 = vmul.f32 %v1175_v14, %v1175_v14 }
 0x82c   : > { %v1177_v16 = vsel %vm839_vm3, %v1176_v15, 0.0 }
 0x82d   : > { %1178 = vadd.xlane.f32.xlu0 %v1177_v16 }
 0x8ba   : > { %v1179_v22 = vpop.xlane.xlu0 %1178 }
 0x8bb   : > { %v1180_v23 = vmul.f32 0.03125, %v1179_v22 }
 0x8bd   : > { %v1181_v24 = vadd.f32 1e-05, %v1180_v23 }
 0x8bf   : > { %2049 = vrsqrt.f32 %v1181_v24 }
 0x8c9   : > { %v2050_v25 = vpop.eup %2049 }
 0x8ca   : > { %v1183_v27 = vmul.f32 %v2050_v25, %v1175_v14 }
 0x8cc   : > { %v1190_v29 = vmul.f32 %v1713_v26, %v1183_v27 }
 0x8ce   : > { %v1197_v30 = vadd.f32 %v1714_v28, %v1190_v29 }
 0x8d0   : > { %v1198_v31 = vpack.c.bf16 %v1197_v30, %v1197_v30 }
 0x8d2   : > { %1789 = vmatmul.mubr.msk.bf16.vlgmr.msra.gmra.mrb[0].mxu0 %vm839_vm3, %v1198_v31 }
 0x9a5   : > { %v1259_v35 = vpop.f32.mrb[0].mxu0 }
 0x9a6   : > { %v1260_v36 = vadd.f32 %v1715_v34, %v1259_v35  ;;  %v1790_v37 = vpop.f32.mrb[1].mxu0 }
 0x9a7   : > { %v1262_v38 = vpop.f32.mrb[2].mxu0 }
 0x9a8   : > { %v1265_v39 = vmax.f32 %v1260_v36, 0.0  ;;  %v1791_v40 = vpop.f32.mrb[3].mxu0 }
 0x9aa   : > { %v1266_v41 = vpack.c.bf16 %v1265_v39, %v1265_v39 }
 0x9ac   : > { %1801 = vmatmul.mubr.msk.bf16.vlgmr.msra.gmra.mrb[0].mxu1 %vm1306_vm13, %v1266_v41 }
 0xa7f   : > { %v1344_v43 = vpop.f32.mrb[0].mxu1 }
 0xa80   : > { %v1345_v44 = vadd.f32 %v1719_v42, %v1344_v43  ;;  %v1802_v45 = vpop.f32.mrb[1].mxu1 }
 0xa81   : > { %v1347_v46 = vpop.f32.mrb[2].mxu1 }
 0xa82   : > { %v1803_v47 = vpop.f32.mrb[3].mxu1  ;;  %v1350_v48 = vadd.f32 %v1345_v44, %v1197_v30 }
 0xa84   : > { %v1353_v49 = vsel %vm839_vm3, %v1350_v48, 0.0 }
 0xa85   : > { %1354 = vadd.xlane.f32.xlu1 %v1353_v49 }
 0xb12   : > { %v1355_v50 = vpop.xlane.xlu1 %1354 }
 0xb13   : > { %v1356_v51 = vmul.f32 0.03125, %v1355_v50 }
 0xb15   : > { %v1357_v52 = vsub.f32 %v1350_v48, %v1356_v51 }
 0xb17   : > { %v1358_v53 = vmul.f32 %v1357_v52, %v1357_v52 }
 0xb19   : > { %v1359_v54 = vsel %vm839_vm3, %v1358_v53, 0.0 }
 0xb1a   : > { %1360 = vadd.xlane.f32.xlu1 %v1359_v54 }
 0xba7   : > { %v1361_v55 = vpop.xlane.xlu1 %1360 }
 0xba8   : > { %v1362_v56 = vmul.f32 0.03125, %v1361_v55 }
 0xbaa   : > { %v1363_v57 = vadd.f32 1e-05, %v1362_v56 }
 0xbac   : > { %2051 = vrsqrt.f32 %v1363_v57 }
 0xbb6   : > { %v2052_v58 = vpop.eup %2051 }
 0xbb7   : > { %v1365_v60 = vmul.f32 %v2052_v58, %v1357_v52 }
 0xbb9   : > { %v1372_v62 = vmul.f32 %v1725_v59, %v1365_v60 }
 0xbbb   : > { %v1379_v63 = vadd.f32 %v1726_v61, %v1372_v62 }
 0xbbd   : > { %1380 = vst.msk [vmem:[%s813_s13] sm:$0xff] %vm839_vm3, %v1379_v63 }
 0xbbe PF: > { %s3630_s30 = sld [smem:[#allocation43_spill]]  ;;  %s3631_s20 = sld [smem:[#allocation66_spill]] }
 0xbbf   : > { %s1395_s27 = sshll.u32 %s813_s13, 4  ;;  %s1382_s10 = scalar_lea.sflag [#allocation5], %s663_s21  ;;  %s1396_s27 = int_to_ptr.vmem [resolvable:$true] %s1395_s27 }
 0xbc0   : > { %s2485_s9 = scalar_lea.vmem %s1396_s27, 128  ;;  %p3633_p8 = scmp.ne.s32.totalorder %s3581_s18, 0 }
 0xbc1   : > { %p2486_p6 = scmp.ne.s32.totalorder %s1396_s27, %s2485_s9  ;;  %s2678_s29 = smov [#allocation26]  }
 0xbc2   : > { %s2489_s4 = sshll.u32 %s2678_s29, 4  ;;  %s2490_s4 = int_to_ptr.vmem [resolvable:$false] %s2489_s4 }
 0xbc3   : > { %p2487_p10 = pnand %p2486_p6, %p3633_p8  ;;  %s2491_s5 = scalar_lea.vmem %s2490_s4, 256 }
 0xbc4   : > { %s1728_s15 = sshll.u32 %s3630_s30, 7  ;;  %s3632_s16 = smov %s3631_s20 }
 0xbc5   : > { %s3425_s23 = scalar_lea.hbm %s3631_s20, %s1728_s15  ;;  %p2488_p7 = pneg %p2487_p10 }
 0xbc6   : > { %p2492_p2 = scmp.lt.s32.totalorder %s1396_s27, %s2490_s4  ;;  %p2493_p12 = scmp.lt.s32.totalorder %s2491_s5, %s2485_s9 }
 0xbc8   : > { %p2494_p11 = por %p2493_p12, %p2492_p2 }
 0xbca   : > { %p2495_p9 = pnand %p2494_p11, %p2488_p7 }
 0xbcc   : > { %2498 = shalt.err (!%p2495_p9)
}
 0xbcd   : > { %s2499_s21 = scalar_lea.hbm %s3425_s23, 128  ;;  %s2503_s25 = scalar_lea.hbm %s3632_s16, 256 }
 0xbce   : > { %p2500_p0 = scmp.ne.s32.totalorder %s3425_s23, %s2499_s21  ;;  %p2504_p3 = scmp.lt.u32.totalorder %s3425_s23, %s3632_s16 }
 0xbcf   : > { %p2505_p1 = scmp.lt.u32.totalorder %s2503_s25, %s2499_s21  ;;  %p2507_p6 = scmp.lt.u32.totalorder %s2499_s21, %s3425_s23 }
 0xbd0   : > { %p2501_p13 = pnand %p2500_p0, %p3633_p8 }
 0xbd1   : > { %p2506_p4 = por %p2505_p1, %p2504_p3 }
 0xbd2   : > { %p2502_p5 = pneg %p2501_p13 }
 0xbd3   : > { %p2508_p10 = por %p2507_p6, %p2506_p4 }
 0xbd5   : > { %p2509_p7 = pnand %p2508_p10, %p2502_p5 }
 0xbd7   : > { %2512 = shalt.err (!%p2509_p7)
}
 0xbd8   : > { %1852 = dma.vmem_to_hbm [thread:$0]  (%p3633_p8), %s1396_s27, 128, %s3425_s23, %s1382_s10  }
 0xbd9 PF: > { %s3634_s30 = sld [smem:[#allocation40_spill]]  ;;  %s3635_s15 = sld [smem:[#allocation50_spill]] }
 0xbda   : > { %p1924_p2 = scmp.ge.s32.totalorder %s2647_s28, 2 }
 0xbdf   : > { %s1407_s2 = sand.u32 1, %s3634_s30   ;;  %p3636_p12 = scmp.ne.s32.totalorder %s3635_s15, 0 }
 0xbe0   : > { %s1408_s24 = scalar_lea.sflag [#allocation5], %s1407_s2 }
 0xbe1   : > { %p1902_p11 = pnand %p1924_p2, %p3636_p12 }
 0xbe3   : > { %2602 = dma.done.wait (!%p1902_p11), %s1408_s24, 128  }
 0xbe4   : > { %2604 = vsyncadd (!%p1902_p11), %s1408_s24, 4294967168  ;;  %s41_s28 = sadd.s32 1, %s2647_s28   ;;  %s3637_s20 = sld [smem:[#allocation39_spill]] }
 0xbe5   : > { %p38_p9 = scmp.ge.s32.totalorder %s41_s28, 6   ;;  %s3638_s9 = sld [smem:[#allocation48_spill]] }
 0xbe6   : > { %s3639_s29 = sld [smem:[#allocation41_spill]]  ;;  %s3640_s23 = sld [smem:[#allocation49_spill]] }
 0xbe7   : > { %s3641_s25 = sld [smem:[#allocation44_spill]]  ;;  %s3642_s27 = sld [smem:[#allocation46_spill]] }
 0xbe8   : > { %s3643_s10 = sld [smem:[#allocation47_spill]]  ;;  %s3644_s18 = smov %s2611_s19 }
 0xbe9   : > { %s3647_s21 = smov %s2623_s22  ;;  %s3649_s24 = smov %s2639_s26 }
 0xbea   : > { %s3645_s19 = smov %s3637_s20  ;;  %40 = sbr.rel (!%p38_p9) target bundleno = 34 (0x22), region = 228 }
 0xbeb   : > { %s3646_s20 = smov %s3638_s9 }
 0xbec   : > { %s3648_s22 = smov %s3639_s29 }
 0xbed   : > { %s3650_s26 = smov %s3642_s27 }
 0xbee   : > { %s3651_s27 = smov %s3643_s10 }
 0xbf1   :  { %1413 = vsyncpa [#allocation4], 1 }
 0xbf2   :  { %1415 = vsyncpa [#allocation4 + $0x1], 1 }
 0xbf3   :  { %1416 = vsyncpa [#allocation7], 1 }
 0xbf4   :  { %1418 = vsyncpa [#allocation7 + $0x1], 1 }
 0xbf5   :  { %1419 = vsyncpa [#allocation10], 1 }
 0xbf6   :  { %1421 = vsyncpa [#allocation10 + $0x1], 1 }
 0xbf7   :  { %1422 = vsyncpa [#allocation13], 1 }
 0xbf8   :  { %1423 = vsyncpa [#allocation19], 1 }
 0xbf9   :  { %1424 = vsyncpa [#allocation22], 1 }
 0xbfa   :  { %1425 = vsyncpa [#allocation25], 1 }
 0xbfb   :  { %1426 = vsyncpa [#allocation5], 1 }
 0xbfc   :  { %1428 = vsyncpa [#allocation5 + $0x1], 1 }

</bundles_post_ra>
